<compile_context>
chip_gen: v7x
topology: tpu7x:2x2x1
jax: 0.10.0
libtpu: 0.0.40
codegen_flags: <defaults>
</compile_context>

<pallas_src>
import jax
import jax.numpy as jnp
from jax.experimental import pallas as pl
from jax.experimental.pallas import tpu as pltpu

C_IN = 300
C_PAD = 304          # channel count padded to a multiple of 16 (bf16 sublane packing)
C_OUT = 512
KSIZE = 3
LANE = 128


def _round_up(x, m):
    return ((x + m - 1) // m) * m


def _conv1d_ncw_kernel(x_ref, xh_ref, w_ref, b_ref, o_ref):
    # x_ref:  (C_PAD, TL)         main input tile; rows >= C_IN are uninitialized
    #                             (partial block along channels) -> masked below.
    # xh_ref: (C_PAD, LANE)       halo: the 128 columns that follow this tile.
    # w_ref:  (C_OUT, K*C_PAD)    bf16 fused weights; padded-channel rows are zero.
    # b_ref:  (C_OUT, 1)          f32 bias.
    # o_ref:  (C_OUT, TL)         f32 output tile (lane-dense).
    tl = x_ref.shape[1]

    # Cast to bf16 and zero the (uninitialized) padded channel rows so garbage
    # (possibly NaN/Inf) can never reach the MXU accumulation.
    row = jax.lax.broadcasted_iota(jnp.int32, (C_PAD, 1), 0)
    ch_mask = row < C_IN
    x_bf = jnp.where(ch_mask, x_ref[...].astype(jnp.bfloat16), 0)
    xh_bf = jnp.where(ch_mask, xh_ref[...].astype(jnp.bfloat16), 0)

    # Extended slab (lane-aligned concat), then the in-kernel im2col stack:
    # x_cat[k*C_PAD + i, c] = x[i, c + k].  Sublane concat offsets are
    # multiples of C_PAD=304 (16-aligned), so these are cheap aligned copies;
    # the k>0 lane shifts ride on the XLU under MXU work.
    x_ext = jnp.concatenate([x_bf, xh_bf], axis=1)            # (C_PAD, TL+LANE)
    x_cat = jnp.concatenate([x_ext[:, k:k + tl] for k in range(KSIZE)], axis=0)

    # Single fused MXU contraction (K = 912 -> pads to 1024), f32 accumulation.
    acc = jnp.dot(w_ref[...], x_cat, preferred_element_type=jnp.float32)

    # Bias add + cast epilogue (VALU, free under MXU load).
    o_ref[...] = (acc + b_ref[...]).astype(o_ref.dtype)


def nn_classifier_forward(x_ncw, weight, bias, *, tile_l=1024):
    """x_ncw: (B, 300, L) f32/bf16; weight: (512, 300, 3); bias: (512,).

    Returns y: (B, 512, L-2) float32, matching nn.Conv1d(300, 512, 3)
    (valid conv, stride 1).  Matmul runs in bf16 on the MXU with f32 accumulation.
    """
    B, c_in, L = x_ncw.shape
    assert c_in == C_IN and L >= KSIZE
    l_out = L - (KSIZE - 1)

    # L tile: multiple of 128 (lane-dense output), capped at tile_l.
    tl = min(_round_up(tile_l, LANE), _round_up(l_out, LANE))
    n_tiles = pl.cdiv(l_out, tl)
    halo_stride = tl // LANE                 # halo block index in units of 128 lanes
    last_halo_block = (L - 1) // LANE        # last 128-lane block with any valid data

    # Weights are tiny: fuse taps and pad channels once in the wrapper.
    # w_fused[o, k*C_PAD + i] = weight[o, i, k] (zero for i >= C_IN).
    w_t = jnp.transpose(weight, (0, 2, 1))                      # (C_OUT, K, C_IN)
    w_t = jnp.pad(w_t, ((0, 0), (0, 0), (0, C_PAD - C_IN)))     # (C_OUT, K, C_PAD)
    w_fused = w_t.reshape(C_OUT, KSIZE * C_PAD).astype(jnp.bfloat16)
    b_2d = bias.astype(jnp.float32).reshape(C_OUT, 1)

    flops = 2 * B * l_out * C_OUT * C_IN * KSIZE
    x_elem_bytes = 2 if x_ncw.dtype == jnp.bfloat16 else 4
    x_bytes = B * C_IN * x_elem_bytes * (min(n_tiles * tl, L) + n_tiles * LANE)
    bytes_accessed = (x_bytes + w_fused.size * 2 + C_OUT * 4
                      + B * C_OUT * l_out * 4)
    ce = pl.CostEstimate(flops=flops, transcendentals=0,
                         bytes_accessed=bytes_accessed)

    def x_map(b, j):
        return (b, 0, j)

    def halo_map(b, j):
        # Clamp so the halo block never starts past the end of x.  When the
        # clamp engages, the (wrong) halo data only feeds output columns that
        # are dropped by the masked final-block writeback.
        return (b, 0, jnp.minimum((j + 1) * halo_stride, last_halo_block))

    y = pl.pallas_call(
        _conv1d_ncw_kernel,
        out_shape=jax.ShapeDtypeStruct((B, C_OUT, l_out), jnp.float32),
        grid_spec=pltpu.PrefetchScalarGridSpec(
            num_scalar_prefetch=0,
            grid=(B, n_tiles),
            in_specs=[
                # main (C_PAD, TL) tile of x (partial along channels and,
                # for the last tile, along L -> masked DMA)
                pl.BlockSpec((None, C_PAD, tl), x_map),
                # 128-wide halo at the start of the next tile
                pl.BlockSpec((None, C_PAD, LANE), halo_map),
                # resident fused weights / bias (constant block index)
                pl.BlockSpec((C_OUT, KSIZE * C_PAD), lambda b, j: (0, 0)),
                pl.BlockSpec((C_OUT, 1), lambda b, j: (0, 0)),
            ],
            out_specs=pl.BlockSpec((None, C_OUT, tl), x_map),
        ),
        compiler_params=pltpu.CompilerParams(
            dimension_semantics=("parallel", "parallel"),
            vmem_limit_bytes=32 * 1024 * 1024,
        ),
        cost_estimate=ce,
    )(x_ncw, x_ncw, w_fused, b_2d)

    return y


def conv1d_reference(x_ncw, weight, bias):
    # Pure-JAX reference for correctness checking.
    return jax.lax.conv_general_dilated(
        x_ncw, weight, window_strides=(1,), padding="VALID",
        dimension_numbers=("NCH", "OIH", "NCH"),
        precision=jax.lax.Precision.HIGHEST) + bias[None, :, None]


if __name__ == "__main__":
    key = jax.random.PRNGKey(0)
    k_x, k_w, k_b, k_x2 = jax.random.split(key, 4)

    B, L = 2, 16  # small example: (batch=2, C_in=300, seq=16)
    x = jax.random.normal(k_x, (B, C_IN, L), dtype=jnp.float32)

    # Deterministic parameter init mirroring nn.Conv1d shapes:
    # weight (out=512, in=300, k=3), bias (512,)
    fan_in = C_IN * KSIZE
    bound = 1.0 / (fan_in ** 0.5)
    weight = jax.random.uniform(k_w, (C_OUT, C_IN, KSIZE),
                                minval=-bound, maxval=bound, dtype=jnp.float32)
    bias = jax.random.uniform(k_b, (C_OUT,),
                              minval=-bound, maxval=bound, dtype=jnp.float32)

    y = jax.block_until_ready(nn_classifier_forward(x, weight, bias))

    # The PyTorch forward prints y.shape; mirror it for fidelity.
    print(y.shape)  # (2, 512, 14)
    assert y.shape == (B, C_OUT, L - 2)

    # Kernel uses bf16 matmul inputs with f32 accumulation; compare against a
    # reference computed on bf16-rounded x/weight (bias stays f32).
    x_bf = x.astype(jnp.bfloat16).astype(jnp.float32)
    w_bf = weight.astype(jnp.bfloat16).astype(jnp.float32)
    y_ref = jax.block_until_ready(conv1d_reference(x_bf, w_bf, bias))
    assert jnp.allclose(y, y_ref, atol=2e-3, rtol=2e-3)

    # Loose sanity check against the full-f32 reference (bf16 rounding noise).
    y_ref_f32 = jax.block_until_ready(conv1d_reference(x, weight, bias))
    assert jnp.allclose(y, y_ref_f32, atol=6e-2, rtol=6e-2)

    # Exercise the multi-tile path: >1 L tile, real halo use, clamped halo on
    # the last tile, and masked partial-block reads/writes.
    L2 = 1200
    x2 = jax.random.normal(k_x2, (1, C_IN, L2), dtype=jnp.float32)
    y2 = jax.block_until_ready(nn_classifier_forward(x2, weight, bias))
    assert y2.shape == (1, C_OUT, L2 - 2)
    x2_bf = x2.astype(jnp.bfloat16).astype(jnp.float32)
    y2_ref = jax.block_until_ready(conv1d_reference(x2_bf, w_bf, bias))
    assert jnp.allclose(y2, y2_ref, atol=2e-3, rtol=2e-3)

    print("KERNEL_OK")
</pallas_src>

<mosaic_0001>
module attributes {stable_mosaic.version = 11 : i64} {
  func.func @_conv1d_ncw_kernel(%arg0: i32, %arg1: i32, %arg2: memref<1x304x128xf32, #tpu.memory_space<vmem>>, %arg3: memref<1x304x128xf32, #tpu.memory_space<vmem>>, %arg4: memref<512x912xbf16, #tpu.memory_space<vmem>>, %arg5: memref<512x1xf32, #tpu.memory_space<vmem>>, %arg6: memref<1x512x128xf32, #tpu.memory_space<vmem>>) attributes {dimension_semantics = [#tpu.dimension_semantics<parallel>, #tpu.dimension_semantics<parallel>], iteration_bounds = array<i64: 2, 1>, scalar_prefetch = 0 : i64, scratch_operands = 0 : i64, tpu.core_type = #tpu.core_type<tc>, window_params = [{transform_indices = @transform_0, window_bounds = array<i64: 1, 304, 128>}, {transform_indices = @transform_1, window_bounds = array<i64: 1, 304, 128>}, {pipeline_mode = #tpu.pipeline_mode<synchronous>, transform_indices = @transform_2, window_bounds = array<i64: 512, 912>}, {pipeline_mode = #tpu.pipeline_mode<synchronous>, transform_indices = @transform_3, window_bounds = array<i64: 512, 1>}, {transform_indices = @transform_4, window_bounds = array<i64: 1, 512, 128>}]} {
    %0 = tpu.iota {dimensions = array<i32: 0>} : vector<304x1xi32>
    %c300_i32 = arith.constant 300 : i32
    %1 = vector.broadcast %c300_i32 : i32 to vector<304x1xi32>
    %2 = arith.cmpi slt, %0, %1 : vector<304x1xi32>
    %c0 = arith.constant 0 : index
    %c0_0 = arith.constant 0 : index
    %c0_1 = arith.constant 0 : index
    %3 = vector.load %arg2[%c0, %c0_0, %c0_1] : memref<1x304x128xf32, #tpu.memory_space<vmem>>, vector<1x304x128xf32>
    %4 = vector.shape_cast %3 : vector<1x304x128xf32> to vector<304x128xf32>
    %5 = arith.truncf %4 : vector<304x128xf32> to vector<304x128xbf16>
    %c0_i32 = arith.constant 0 : i32
    %6 = arith.sitofp %c0_i32 : i32 to bf16
    %7 = vector.shape_cast %2 : vector<304x1xi1> to vector<304x1xi1>
    %8 = vector.broadcast %7 : vector<304x1xi1> to vector<304x128xi1>
    %9 = vector.broadcast %6 : bf16 to vector<304x128xbf16>
    %10 = arith.select %8, %5, %9 : vector<304x128xi1>, vector<304x128xbf16>
    %c0_2 = arith.constant 0 : index
    %c0_3 = arith.constant 0 : index
    %c0_4 = arith.constant 0 : index
    %11 = vector.load %arg3[%c0_2, %c0_3, %c0_4] : memref<1x304x128xf32, #tpu.memory_space<vmem>>, vector<1x304x128xf32>
    %12 = vector.shape_cast %11 : vector<1x304x128xf32> to vector<304x128xf32>
    %13 = arith.truncf %12 : vector<304x128xf32> to vector<304x128xbf16>
    %c0_i32_5 = arith.constant 0 : i32
    %14 = arith.sitofp %c0_i32_5 : i32 to bf16
    %15 = vector.shape_cast %2 : vector<304x1xi1> to vector<304x1xi1>
    %16 = vector.broadcast %15 : vector<304x1xi1> to vector<304x128xi1>
    %17 = vector.broadcast %14 : bf16 to vector<304x128xbf16>
    %18 = arith.select %16, %13, %17 : vector<304x128xi1>, vector<304x128xbf16>
    %19 = tpu.concatenate %10, %18 in 1 : vector<304x128xbf16>, vector<304x128xbf16> -> vector<304x256xbf16>
    %20 = vector.extract_strided_slice %19 {offsets = [0, 0], sizes = [304, 128], strides = [1, 1]} : vector<304x256xbf16> to vector<304x128xbf16>
    %21 = vector.extract_strided_slice %19 {offsets = [0, 1], sizes = [304, 128], strides = [1, 1]} : vector<304x256xbf16> to vector<304x128xbf16>
    %22 = vector.extract_strided_slice %19 {offsets = [0, 2], sizes = [304, 128], strides = [1, 1]} : vector<304x256xbf16> to vector<304x128xbf16>
    %23 = tpu.concatenate %20, %21, %22 in 0 : vector<304x128xbf16>, vector<304x128xbf16>, vector<304x128xbf16> -> vector<912x128xbf16>
    %c0_6 = arith.constant 0 : index
    %c0_7 = arith.constant 0 : index
    %24 = vector.load %arg4[%c0_6, %c0_7] : memref<512x912xbf16, #tpu.memory_space<vmem>>, vector<512x912xbf16>
    %cst = arith.constant dense<0.000000e+00> : vector<512x128xf32>
    %25 = tpu.matmul %24, %23, %cst {dimension_numbers = #tpu.dot_dimension_numbers<[1], [0], [0], [1], [0, 0, 1, 1], [], []>} : vector<512x912xbf16>, vector<912x128xbf16>, vector<512x128xf32> -> vector<512x128xf32>
    %c0_8 = arith.constant 0 : index
    %c0_9 = arith.constant 0 : index
    %26 = vector.load %arg5[%c0_8, %c0_9] : memref<512x1xf32, #tpu.memory_space<vmem>>, vector<512x1xf32>
    %27 = vector.broadcast %26 : vector<512x1xf32> to vector<512x128xf32>
    %28 = arith.addf %25, %27 : vector<512x128xf32>
    %c0_10 = arith.constant 0 : index
    %c0_11 = arith.constant 0 : index
    %c0_12 = arith.constant 0 : index
    %29 = vector.load %arg6[%c0_10, %c0_11, %c0_12] : memref<1x512x128xf32, #tpu.memory_space<vmem>>, vector<1x512x128xf32>
    %30 = vector.shape_cast %29 : vector<1x512x128xf32> to vector<512x128xf32>
    %31 = vector.shape_cast %28 : vector<512x128xf32> to vector<1x512x128xf32>
    tpu.vector_store %arg6[%c0_10, %c0_11, %c0_12], %31 {strides = array<i32>} : memref<1x512x128xf32, #tpu.memory_space<vmem>>, vector<1x512x128xf32>,
    return
  }
  func.func @transform_0(%arg0: i32, %arg1: i32) -> (i32, i32, i32) {
    %c0_i32 = arith.constant 0 : i32
    %c0_i32_0 = arith.constant 0 : i32
    return %arg0, %c0_i32, %arg1 : i32, i32, i32
  }
  func.func @transform_1(%arg0: i32, %arg1: i32) -> (i32, i32, i32) {
    %c1_i32 = arith.constant 1 : i32
    %0 = arith.addi %arg1, %c1_i32 : i32
    %c1_i32_0 = arith.constant 1 : i32
    %1 = arith.muli %0, %c1_i32_0 : i32
    %c0_i32 = arith.constant 0 : i32
    %2 = arith.minsi %1, %c0_i32 : i32
    %c0_i32_1 = arith.constant 0 : i32
    %c0_i32_2 = arith.constant 0 : i32
    return %arg0, %c0_i32_1, %2 : i32, i32, i32
  }
  func.func @transform_2(%arg0: i32, %arg1: i32) -> (i32, i32) {
    %c0_i32 = arith.constant 0 : i32
    %c0_i32_0 = arith.constant 0 : i32
    %c0_i32_1 = arith.constant 0 : i32
    return %c0_i32, %c0_i32_0 : i32, i32
  }
  func.func @transform_3(%arg0: i32, %arg1: i32) -> (i32, i32) {
    %c0_i32 = arith.constant 0 : i32
    %c0_i32_0 = arith.constant 0 : i32
    %c0_i32_1 = arith.constant 0 : i32
    return %c0_i32, %c0_i32_0 : i32, i32
  }
  func.func @transform_4(%arg0: i32, %arg1: i32) -> (i32, i32, i32) {
    %c0_i32 = arith.constant 0 : i32
    %c0_i32_0 = arith.constant 0 : i32
    return %arg0, %c0_i32, %arg1 : i32, i32, i32
  }
}

</mosaic_0001>

<bundles_post_ra>
// kernel: tpu_custom_call.1
= control target key start
LH: loop header
LB: loop body
LE: loop exit
PB: predicated region body
PF: predicated region fallthrough
CT: control target
= control target key end

     0   :  { %s5102_s15 = smov 0   ;;  %s5104_s16 = smov 0   ;;  %s6921_s0 = inlined_call_operand.vmem [shape: f32[2,300,16], index: 0, kind: input, shape index: {}]   ;;  %s6922_s1 = inlined_call_operand.vmem [shape: f32[2,300,16], index: 1, kind: input, shape index: {}]   ;;  %s6923_s2 = inlined_call_operand.vmem [shape: bf16[512,912], index: 2, kind: input, shape index: {}]   ;;  %s6924_s3 = inlined_call_operand.vmem [shape: f32[512,1], index: 3, kind: input, shape index: {}]   ;;  %s6925_s4 = inlined_call_operand.vmem [shape: f32[2,512,14], index: 4, kind: output, shape index: {}]  }
   0x1   :  { %s5106_s17 = smov 0  }
   0x2 LB: > { %s26_s18 = sadd.s32 1, %s5067_s16  ;;  %p4319_p0 = scmp.ge.s32.totalorder %s5071_s17, 1  ;;  %s5071_s17 = sphi %s5106_s17, %s14_s17   ;;  %s5067_s16 = sphi %s5104_s16, %s6929_s16   ;;  %s5063_s15 = sphi %s5102_s15, %s6928_s15  }
   0x3   : > { %p28_p1 = scmp.ge.s32.totalorder %s26_s18, 2  ;;  %p208_p2 = scmp.lt.s32.totalorder %s5071_s17, 3 }
   0x5   : > { %s6931_s18 = smov (%p28_p1, %s26_s18), 0  ;;  %p209_p3 = pnand %p4319_p0, %p208_p2 }
   0x6   : > { %p251_p4 = scmp.lt.s32.totalorder (!%p209_p3), %s5063_s15, 1  ;;  %v5123_v0 = vld [vmem:[%s6923_s2] sm:$0xff] (!%p209_p3)  ;;  %v5073_v2 = vmov (!%p209_p3), 0   ;;  %vm5074_vm0 = vmmov (!%p209_p3), 1   ;;  %v284_v6 = vlaneseq (!%p209_p3)  ;;  %s5075_s30 = smov (!%p209_p3), 127   ;;  %vm855_vm6 = vcmask (!%p209_p3), 1039360  }
   0x7   : > { %212 = sbr.rel (%p209_p3) target bundleno = 927 (0x39f), region = 36  ;;  %v5128_v1 = vld [vmem:[%s6923_s2 + $0x20] sm:$0xff] (!%p209_p3)  ;;  %2994 = vmatprep.subr.bf16.mxu1 (!%p209_p3), %v5073_v2  ;;  %vm494_vm1 = vmpackc.low (!%p209_p3), %vm5074_vm0, %vm5074_vm0  ;;  %3572 = vmatprep.subr.bf16.mxu0 (!%p209_p3), %v5073_v2  ;;  %s5076_s5 = smov (!%p209_p3), 126   ;;  %vm970_vm7 = vcmask (!%p209_p3), 1031168   ;;  %vm2897_vm8 = vcmask (!%p209_p3), 130048  }
   0x8   : > { %v4343_v3 = vcombine.low (!%p209_p3), %v5123_v0, %v5128_v1  ;;  %v4344_v4 = vcombine.high (!%p209_p3), %v5123_v0, %v5128_v1  ;;  %v5139_v5 = vsel (!%p209_p3), %vm494_vm1, 65537, %v5073_v2  ;;  %5047 = vset.pattern.permute.xlu0 (!%p209_p3), %v5073_v2  ;;  %5048 = vset.pattern.permute.xlu1 (!%p209_p3), %v5073_v2  ;;  %v285_v8 = vshrl.u32 (!%p209_p3), %v284_v6, 7 }
   0x9   : > { %v4324_v7 = vcombine.low (!%p209_p3), %v5139_v5, %v5139_v5 }
   0xa   : > { %3026 = vmatprep.mubr.bf16.mxu1 (!%p209_p3), %v4344_v4  ;;  %v322_v27 = vadd.s32 (!%p209_p3), 296, %v285_v8 }
   0xb   : > { %vm5158_vm2 = vcmp.ne.s16.totalorder (!%p209_p3), %v4324_v7, 0 }
   0xc   : > { %vm360_vm3 = vcmp.lt.s32.totalorder (!%p209_p3), %v322_v27, 300 }
   0xd   : > { %vm531_vm4 = vmpackc.low (!%p209_p3), %vm360_vm3, %vm360_vm3 }
   0xe   : > { %s6933_s15 = smov (!%p251_p4, %s5063_s15), 1  ;;  %v569_v62 = vsel %vm531_vm4, 65537, %v5073_v2 }
   0xf   : > { %s5018_s23 = smul.u32 304, %s6933_s15  ;;  %s4633_s14 = sshll.u32 %s6933_s15, 9 }
  0x10   : > { %s6695_s24 = scalar_lea.vmem %s6925_s4, %s4633_s14 }
  0x11   : > { %s5149_s26 = scalar_lea.vmem %s6921_s0, %s5018_s23  ;;  %s5154_s29 = scalar_lea.vmem %s6922_s1, %s5018_s23 }
  0x12   : > { %v389_v9 = vld [vmem:[%s5149_s26 + $0xe0] sm:$0xff]  ;;  %v390_v10 = vld [vmem:[%s5149_s26 + $0xe8] sm:$0xff]  ;;  %v387_v12 = vld [vmem:[%s5149_s26 + $0xd0] sm:$0xff] }
  0x13   : > { %v413_v13 = vpack.c.bf16 %v390_v10, %v389_v9  ;;  %v388_v14 = vld [vmem:[%s5149_s26 + $0xd8] sm:$0xff]  ;;  %v361_v15 = vld [vmem:[%s5149_s26] sm:$0xff]  ;;  %v362_v16 = vld [vmem:[%s5149_s26 + $0x8] sm:$0xff]  ;;  %v4342_v10 = vcombine.low %v5139_v5, %v569_v62 }
  0x14   : > { %v412_v17 = vpack.c.bf16 %v388_v14, %v387_v12  ;;  %v399_v18 = vpack.c.bf16 %v362_v16, %v361_v15  ;;  %v693_v19 = vld [vmem:[%s5154_s29 + $0xe0] sm:$0xff]  ;;  %v694_v20 = vld [vmem:[%s5154_s29 + $0xe8] sm:$0xff]  ;;  %v691_v21 = vld [vmem:[%s5154_s29 + $0xd0] sm:$0xff] }
  0x15   : > { %v5171_v22 = vsel %vm5158_vm2, %v413_v13, 0  ;;  %v717_v23 = vpack.c.bf16 %v694_v20, %v693_v19  ;;  %v692_v24 = vld [vmem:[%s5154_s29 + $0xd8] sm:$0xff]  ;;  %v363_v25 = vld [vmem:[%s5149_s26 + $0x10] sm:$0xff]  ;;  %v365_v38 = vld [vmem:[%s5149_s26 + $0x20] sm:$0xff]  ;;  %vm645_vm5 = vcmp.ne.s16.totalorder %v4342_v10, 0 }
  0x16   : > { %v364_v26 = vld [vmem:[%s5149_s26 + $0x18] sm:$0xff]  ;;  %835 = vrot.lane.b32.xlu1 %v5171_v22, %s5075_s30  ;;  %v5180_v28 = vsel %vm5158_vm2, %v412_v17, 0  ;;  %v5184_v29 = vsel %vm5158_vm2, %v399_v18, 0  ;;  %v716_v30 = vpack.c.bf16 %v692_v24, %v691_v21  ;;  %v695_v32 = vld [vmem:[%s5154_s29 + $0xf0] sm:$0xff]  ;;  %v366_v39 = vld [vmem:[%s5149_s26 + $0x28] sm:$0xff] }
  0x17   : > { %v400_v31 = vpack.c.bf16 %v364_v26, %v363_v25  ;;  %v696_v33 = vld [vmem:[%s5154_s29 + $0xf8] sm:$0xff]  ;;  %v391_v34 = vld [vmem:[%s5149_s26 + $0xf0] sm:$0xff]  ;;  %831 = vrot.lane.b32.xlu0 %v5180_v28, %s5075_s30  ;;  %2995 = vmatpush1.bf16.msra.mxu1 %v5184_v29  ;;  %v5194_v35 = vsel %vm5158_vm2, %v717_v23, 0  ;;  %v401_v43 = vpack.c.bf16 %v366_v39, %v365_v38  ;;  %v697_v44 = vld [vmem:[%s5154_s29 + $0x100] sm:$0xff] }
  0x18   : > { %v718_v36 = vpack.c.bf16 %v696_v33, %v695_v32  ;;  %v392_v37 = vld [vmem:[%s5149_s26 + $0xf8] sm:$0xff]  ;;  %2996 = vmatprep.subr.bf16.mxu1 %v5073_v2  ;;  %v5202_v40 = vsel %vm5158_vm2, %v716_v30, 0  ;;  %v698_v45 = vld [vmem:[%s5154_s29 + $0x108] sm:$0xff]  ;;  %v393_v46 = vld [vmem:[%s5149_s26 + $0x100] sm:$0xff] }
  0x19   : > { %v5206_v41 = vsel %vm5158_vm2, %v400_v31, 0  ;;  %v414_v42 = vpack.c.bf16 %v392_v37, %v391_v34  ;;  %v394_v47 = vld [vmem:[%s5149_s26 + $0x108] sm:$0xff]  ;;  %v367_v48 = vld [vmem:[%s5149_s26 + $0x30] sm:$0xff]  ;;  %v368_v49 = vld [vmem:[%s5149_s26 + $0x38] sm:$0xff]  ;;  %v719_v51 = vpack.c.bf16 %v698_v45, %v697_v44  ;;  %v5232_v55 = vsel %vm5158_vm2, %v401_v43, 0 }
  0x1a   : > { %837 = vrot.lane.b32.xlu1 %v5194_v35, %s5075_s30  ;;  %v5221_v50 = vsel %vm5158_vm2, %v718_v36, 0  ;;  %v699_v52 = vld [vmem:[%s5154_s29 + $0x110] sm:$0xff]  ;;  %v700_v53 = vld [vmem:[%s5154_s29 + $0x118] sm:$0xff]  ;;  %v415_v56 = vpack.c.bf16 %v394_v47, %v393_v46  ;;  %v402_v57 = vpack.c.bf16 %v368_v49, %v367_v48  ;;  %v369_v60 = vld [vmem:[%s5149_s26 + $0x40] sm:$0xff] }
  0x1b   : > { %833 = vrot.lane.b32.xlu0 %v5202_v40, %s5075_s30  ;;  %2997 = vmatpush1.bf16.msra.mxu1 %v5206_v41  ;;  %v5228_v54 = vsel %vm5158_vm2, %v414_v42, 0  ;;  %v395_v58 = vld [vmem:[%s5149_s26 + $0x110] sm:$0xff]  ;;  %v396_v59 = vld [vmem:[%s5149_s26 + $0x118] sm:$0xff]  ;;  %v370_v61 = vld [vmem:[%s5149_s26 + $0x48] sm:$0xff]  ;;  %v5246_v63 = vsel %vm5158_vm2, %v719_v51, 0  ;;  %v720_v4 = vpack.c.bf16 %v700_v53, %v699_v52 }
  0x1c   : > { %2998 = vmatprep.subr.bf16.mxu1 %v5073_v2  ;;  %v416_v6 = vpack.c.bf16 %v396_v59, %v395_v58  ;;  %v5251_v7 = vsel %vm5158_vm2, %v415_v56, 0  ;;  %v5255_v8 = vsel %vm5158_vm2, %v402_v57, 0  ;;  %v403_v9 = vpack.c.bf16 %v370_v61, %v369_v60  ;;  %v701_v12 = vld [vmem:[%s5154_s29 + $0x120] sm:$0xff]  ;;  %v702_v13 = vld [vmem:[%s5154_s29 + $0x128] sm:$0xff]  ;;  %v371_v16 = vld [vmem:[%s5149_s26 + $0x50] sm:$0xff] }
  0x1d   : > { %v397_v14 = vld [vmem:[%s5149_s26 + $0x120] sm:$0xff]  ;;  %v398_v15 = vld [vmem:[%s5149_s26 + $0x128] sm:$0xff]  ;;  %v372_v17 = vld [vmem:[%s5149_s26 + $0x58] sm:$0xff]  ;;  %v5271_v5 = vsel %vm5158_vm2, %v720_v4, 0  ;;  %v721_v19 = vpack.c.bf16 %v702_v13, %v701_v12 }
  0x1e   : > { %841 = vrot.lane.b32.xlu1 %v5221_v50, %s5075_s30  ;;  %v5275_v18 = vsel %vm5158_vm2, %v416_v6, 0  ;;  %v5280_v20 = vsel %vm5158_vm2, %v403_v9, 0  ;;  %v417_v21 = vpack.c.bf16 %v398_v15, %v397_v14  ;;  %v404_v23 = vpack.c.bf16 %v372_v17, %v371_v16  ;;  %v665_v24 = vld [vmem:[%s5154_s29] sm:$0xff]  ;;  %v666_v25 = vld [vmem:[%s5154_s29 + $0x8] sm:$0xff]  ;;  %v667_v36 = vld [vmem:[%s5154_s29 + $0x10] sm:$0xff] }
  0x1f   : > { %839 = vrot.lane.b32.xlu0 %v5228_v54, %s5075_s30  ;;  %2999 = vmatpush1.bf16.msra.mxu1 %v5232_v55  ;;  %v373_v26 = vld [vmem:[%s5149_s26 + $0x60] sm:$0xff]  ;;  %v374_v27 = vld [vmem:[%s5149_s26 + $0x68] sm:$0xff]  ;;  %v5291_v30 = vsel %vm645_vm5, %v721_v19, 0  ;;  %v703_v31 = vpack.c.bf16 %v666_v25, %v665_v24  ;;  %v668_v37 = vld [vmem:[%s5154_s29 + $0x18] sm:$0xff] }
  0x20   : > { %3000 = vmatprep.subr.bf16.mxu1 %v5073_v2  ;;  %v5294_v32 = vsel %vm645_vm5, %v417_v21, 0  ;;  %v5298_v33 = vsel %vm5158_vm2, %v404_v23, 0  ;;  %v405_v34 = vpack.c.bf16 %v374_v27, %v373_v26  ;;  %v375_v38 = vld [vmem:[%s5149_s26 + $0x70] sm:$0xff]  ;;  %v376_v39 = vld [vmem:[%s5149_s26 + $0x78] sm:$0xff]  ;;  %v685_v42 = vld [vmem:[%s5154_s29 + $0xa0] sm:$0xff]  ;;  %v704_v46 = vpack.c.bf16 %v668_v37, %v667_v36 }
  0x21   : > { %v686_v43 = vld [vmem:[%s5154_s29 + $0xa8] sm:$0xff]  ;;  %v687_v44 = vld [vmem:[%s5154_s29 + $0xb0] sm:$0xff]  ;;  %v5314_v45 = vsel %vm5158_vm2, %v703_v31, 0  ;;  %v688_v48 = vld [vmem:[%s5154_s29 + $0xb8] sm:$0xff]  ;;  %v406_v51 = vpack.c.bf16 %v376_v39, %v375_v38 }
  0x22   : > { %845 = vrot.lane.b32.xlu1 %v5246_v63, %s5075_s30  ;;  %v713_v47 = vpack.c.bf16 %v686_v43, %v685_v42  ;;  %v5320_v49 = vsel %vm5158_vm2, %v405_v34, 0  ;;  %v669_v52 = vld [vmem:[%s5154_s29 + $0x20] sm:$0xff]  ;;  %v670_v53 = vld [vmem:[%s5154_s29 + $0x28] sm:$0xff]  ;;  %v714_v56 = vpack.c.bf16 %v688_v48, %v687_v44  ;;  %v5343_v6 = vsel %vm5158_vm2, %v704_v46, 0  ;;  %v671_v13 = vld [vmem:[%s5154_s29 + $0x30] sm:$0xff] }
  0x23   : > { %843 = vrot.lane.b32.xlu0 %v5251_v7, %s5075_s30  ;;  %3001 = vmatpush1.bf16.msra.mxu1 %v5255_v8  ;;  %v689_v57 = vld [vmem:[%s5154_s29 + $0xc0] sm:$0xff]  ;;  %v378_v59 = vld [vmem:[%s5149_s26 + $0x88] sm:$0xff]  ;;  %v705_v9 = vpack.c.bf16 %v670_v53, %v669_v52  ;;  %v5348_v10 = vsel %vm5158_vm2, %v406_v51, 0  ;;  %v672_v14 = vld [vmem:[%s5154_s29 + $0x38] sm:$0xff] }
  0x24   : > { %3002 = vmatprep.subr.bf16.mxu1 %v5073_v2  ;;  %v377_v58 = vld [vmem:[%s5149_s26 + $0x80] sm:$0xff]  ;;  %v5329_v60 = vsel %vm5158_vm2, %v713_v47, 0  ;;  %v690_v61 = vld [vmem:[%s5154_s29 + $0xc8] sm:$0xff]  ;;  %v5336_v62 = vsel %vm5158_vm2, %v714_v56, 0  ;;  %v379_v16 = vld [vmem:[%s5149_s26 + $0x90] sm:$0xff]  ;;  %v706_v21 = vpack.c.bf16 %v672_v14, %v671_v13 }
  0x25   : > { %v715_v4 = vpack.c.bf16 %v690_v61, %v689_v57  ;;  %v407_v12 = vpack.c.bf16 %v378_v59, %v377_v58  ;;  %v380_v17 = vld [vmem:[%s5149_s26 + $0x98] sm:$0xff]  ;;  %v5365_v19 = vsel %vm5158_vm2, %v705_v9, 0  ;;  %v673_v25 = vld [vmem:[%s5154_s29 + $0x40] sm:$0xff]  ;;  %v674_v26 = vld [vmem:[%s5154_s29 + $0x48] sm:$0xff] }
  0x26   : > { %849 = vrot.lane.b32.xlu1 %v5271_v5, %s5075_s30  ;;  %v408_v24 = vpack.c.bf16 %v380_v17, %v379_v16  ;;  %v381_v27 = vld [vmem:[%s5149_s26 + $0xa0] sm:$0xff]  ;;  %v382_v31 = vld [vmem:[%s5149_s26 + $0xa8] sm:$0xff]  ;;  %v5383_v34 = vsel %vm5158_vm2, %v706_v21, 0  ;;  %v707_v36 = vpack.c.bf16 %v674_v26, %v673_v25  ;;  %v675_v39 = vld [vmem:[%s5154_s29 + $0x50] sm:$0xff] }
  0x27   : > { %847 = vrot.lane.b32.xlu0 %v5275_v18, %s5075_s30  ;;  %3003 = vmatpush1.bf16.msra.mxu1 %v5280_v20  ;;  %v5354_v15 = vsel %vm5158_vm2, %v715_v4, 0  ;;  %v5370_v23 = vsel %vm5158_vm2, %v407_v12, 0  ;;  %v409_v38 = vpack.c.bf16 %v382_v31, %v381_v27  ;;  %v676_v42 = vld [vmem:[%s5154_s29 + $0x58] sm:$0xff]  ;;  %v383_v43 = vld [vmem:[%s5149_s26 + $0xb0] sm:$0xff]  ;;  %v677_v52 = vld [vmem:[%s5154_s29 + $0x60] sm:$0xff] }
  0x28   : > { %3004 = vmatprep.subr.bf16.mxu1 %v5073_v2  ;;  %v5388_v37 = vsel %vm5158_vm2, %v408_v24, 0  ;;  %v384_v44 = vld [vmem:[%s5149_s26 + $0xb8] sm:$0xff]  ;;  %v5401_v46 = vsel %vm5158_vm2, %v707_v36, 0  ;;  %v708_v47 = vpack.c.bf16 %v676_v42, %v675_v39  ;;  %v678_v53 = vld [vmem:[%s5154_s29 + $0x68] sm:$0xff]  ;;  %v385_v56 = vld [vmem:[%s5149_s26 + $0xc0] sm:$0xff] }
  0x29   : > { %v5406_v48 = vsel %vm5158_vm2, %v409_v38, 0  ;;  %v410_v51 = vpack.c.bf16 %v384_v44, %v383_v43  ;;  %v386_v57 = vld [vmem:[%s5149_s26 + $0xc8] sm:$0xff]  ;;  %v709_v59 = vpack.c.bf16 %v678_v53, %v677_v52  ;;  %v679_v9 = vld [vmem:[%s5154_s29 + $0x70] sm:$0xff]  ;;  %v680_v12 = vld [vmem:[%s5154_s29 + $0x78] sm:$0xff] }
  0x2a   : > { %853 = vrot.lane.b32.xlu1 %v5291_v30, %s5075_s30  ;;  %v5419_v58 = vsel %vm5158_vm2, %v708_v47, 0  ;;  %v411_v4 = vpack.c.bf16 %v386_v57, %v385_v56  ;;  %v710_v14 = vpack.c.bf16 %v680_v12, %v679_v9  ;;  %v681_v17 = vld [vmem:[%s5154_s29 + $0x80] sm:$0xff]  ;;  %v682_v21 = vld [vmem:[%s5154_s29 + $0x88] sm:$0xff]  ;;  %v683_v26 = vld [vmem:[%s5154_s29 + $0x90] sm:$0xff] }
  0x2b   : > { %851 = vrot.lane.b32.xlu0 %v5294_v32, %s5075_s30  ;;  %3005 = vmatpush1.bf16.msra.mxu1 %v5298_v33  ;;  %v5424_v61 = vsel %vm5158_vm2, %v410_v51, 0  ;;  %v5435_v13 = vsel %vm5158_vm2, %v709_v59, 0  ;;  %v711_v25 = vpack.c.bf16 %v682_v21, %v681_v17  ;;  %v684_v27 = vld [vmem:[%s5154_s29 + $0x98] sm:$0xff]  ;;  %v5461_v31 = vld [vmem:[%s6923_s2 + $0x10] sm:$0xff]  ;;  %v1017_v47 = vld [vmem:[%s6923_s2 + $0x40] sm:$0xff] }
  0x2c   : > { %3006 = vmatprep.subr.bf16.mxu1 %v5073_v2  ;;  %v5440_v16 = vsel %vm5158_vm2, %v411_v4, 0  ;;  %v5451_v24 = vsel %vm5158_vm2, %v710_v14, 0  ;;  %v5466_v36 = vld [vmem:[%s6923_s2 + $0x30] sm:$0xff]  ;;  %v712_v39 = vpack.c.bf16 %v684_v27, %v683_v26  ;;  %v1021_v51 = vld [vmem:[%s6923_s2 + $0x60] sm:$0xff] }
  0x2d   : > { %v5473_v38 = vsel %vm5158_vm2, %v711_v25, 0  ;;  %v4347_v42 = vcombine.low %v5461_v31, %v5466_v36  ;;  %v4348_v43 = vcombine.high %v5461_v31, %v5466_v36  ;;  %v4352_v11 = vcombine.high %v1017_v47, %v1021_v51  ;;  %v1025_v52 = vld [vmem:[%s6923_s2 + $0x80] sm:$0xff] }
  0x2e   : > { %896 = vrot.lane.b32.xlu1 %v5314_v45, %s5076_s5  ;;  %v5487_v44 = vsel %vm5158_vm2, %v712_v39, 0  ;;  %v1029_v53 = vld [vmem:[%s6923_s2 + $0xa0] sm:$0xff]  ;;  %v4351_v0 = vcombine.low %v1017_v47, %v1021_v51 }
  0x2f   : > { %894 = vrot.lane.b32.xlu0 %v5184_v29, %s5076_s5  ;;  %3007 = vmatpush1.bf16.msra.mxu1 %v5320_v49  ;;  %v4360_v1 = vcombine.high %v1025_v52, %v1029_v53  ;;  %v1061_v57 = vld [vmem:[%s6923_s2 + $0x1a0] sm:$0xff] }
  0x30   : > { %3008 = vmatprep.subr.bf16.mxu1 %v5073_v2  ;;  %3604 = vmatprep.mubr.bf16.mxu0 %v4348_v43  ;;  %v1069_v4 = vld [vmem:[%s6923_s2 + $0x1e0] sm:$0xff] }
  0x31   : > { %v1089_v51 = vld [vmem:[%s6923_s2 + $0x280] sm:$0xff] }
  0x32   : > { %900 = vrot.lane.b32.xlu1 %v5343_v6, %s5076_s5  ;;  %v1145_v31 = vld [vmem:[%s6923_s2 + $0x440] sm:$0xff] }
  0x33   : > { %898 = vrot.lane.b32.xlu0 %v5206_v41, %s5076_s5  ;;  %3009 = vmatpush1.bf16.msra.mxu1 %v5348_v10  ;;  %v1149_v36 = vld [vmem:[%s6923_s2 + $0x460] sm:$0xff] }
  0x34   : > { %3010 = vmatprep.subr.bf16.mxu1 %v5073_v2 }
  0x36   : > { %904 = vrot.lane.b32.xlu1 %v5365_v19, %s5076_s5 }
  0x37   : > { %902 = vrot.lane.b32.xlu0 %v5232_v55, %s5076_s5  ;;  %3011 = vmatpush1.bf16.msra.mxu1 %v5370_v23 }
  0x38   : > { %3012 = vmatprep.subr.bf16.mxu1 %v5073_v2 }
  0x3a   : > { %908 = vrot.lane.b32.xlu1 %v5383_v34, %s5076_s5 }
  0x3b   : > { %906 = vrot.lane.b32.xlu0 %v5255_v8, %s5076_s5  ;;  %3013 = vmatpush1.bf16.msra.mxu1 %v5388_v37 }
  0x3c   : > { %3014 = vmatprep.subr.bf16.mxu1 %v5073_v2 }
  0x3e   : > { %912 = vrot.lane.b32.xlu1 %v5401_v46, %s5076_s5 }
  0x3f   : > { %910 = vrot.lane.b32.xlu0 %v5280_v20, %s5076_s5  ;;  %3015 = vmatpush1.bf16.msra.mxu1 %v5406_v48 }
  0x40   : > { %3016 = vmatprep.subr.bf16.mxu1 %v5073_v2 }
  0x42   : > { %916 = vrot.lane.b32.xlu1 %v5419_v58, %s5076_s5 }
  0x43   : > { %914 = vrot.lane.b32.xlu0 %v5298_v33, %s5076_s5  ;;  %3017 = vmatpush1.bf16.msra.mxu1 %v5424_v61 }
  0x44   : > { %3018 = vmatprep.subr.bf16.mxu1 %v5073_v2 }
  0x46   : > { %920 = vrot.lane.b32.xlu1 %v5435_v13, %s5076_s5 }
  0x47   : > { %918 = vrot.lane.b32.xlu0 %v5320_v49, %s5076_s5  ;;  %3019 = vmatpush1.bf16.msra.mxu1 %v5440_v16 }
  0x48   : > { %3020 = vmatprep.subr.bf16.mxu1 %v5073_v2 }
  0x4a   : > { %924 = vrot.lane.b32.xlu1 %v5451_v24, %s5076_s5 }
  0x4b   : > { %922 = vrot.lane.b32.xlu0 %v5348_v10, %s5076_s5  ;;  %3021 = vmatpush1.bf16.msra.mxu1 %v5180_v28 }
  0x4c   : > { %3022 = vmatprep.subr.bf16.mxu1 %v5073_v2 }
  0x4e   : > { %928 = vrot.lane.b32.xlu1 %v5473_v38, %s5076_s5 }
  0x4f   : > { %926 = vrot.lane.b32.xlu0 %v5370_v23, %s5076_s5  ;;  %3023 = vmatpush1.bf16.msra.mxu1 %v5171_v22 }
  0x50   : > { %3024 = vmatprep.subr.bf16.mxu1 %v5073_v2 }
  0x52   : > { %932 = vrot.lane.b32.xlu1 %v5487_v44, %s5076_s5 }
  0x53   : > { %930 = vrot.lane.b32.xlu0 %v5388_v37, %s5076_s5  ;;  %3025 = vmatpush1.bf16.msra.mxu1 %v5228_v54 }
  0x54   : > { %3283 = vmatprep.subr.bf16.mxu1 %v5073_v2 }
  0x56   : > { %3027 = vmatmul.mubr.bf16.vlgmr.msra.gmra.mrb[0].mxu1 %v4343_v3  ;;  %781 = vrot.lane.b32.xlu1 %v5314_v45, %s5075_s30  ;;  %v1033_v3 = vld [vmem:[%s6923_s2 + $0xc0] sm:$0xff] }
  0x57   : > { %779 = vrot.lane.b32.xlu0 %v5184_v29, %s5075_s30  ;;  %3034 = vmatprep.mubr.bf16.mxu1 %v4352_v11  ;;  %v1037_v29 = vld [vmem:[%s6923_s2 + $0xe0] sm:$0xff] }
  0x58   : > { %3284 = vmatpush1.bf16.msra.mxu1 %v5251_v7  ;;  %v1041_v45 = vld [vmem:[%s6923_s2 + $0x100] sm:$0xff] }
  0x59   : > { %3285 = vmatprep.subr.bf16.mxu1 %v5073_v2 }
  0x5a   : > { %785 = vrot.lane.b32.xlu1 %v5343_v6, %s5075_s30  ;;  %v1045_v6 = vld [vmem:[%s6923_s2 + $0x120] sm:$0xff] }
  0x5b   : > { %783 = vrot.lane.b32.xlu0 %v5206_v41, %s5075_s30  ;;  %v4359_v41 = vcombine.low %v1025_v52, %v1029_v53 }
  0x5c   : > { %3286 = vmatpush1.bf16.msra.mxu1 %v5275_v18 }
  0x5d   : > { %3287 = vmatprep.subr.bf16.mxu1 %v5073_v2 }
  0x5e   : > { %3035 = vmatmul.mubr.bf16.gmra.mrb[4].mxu1 %v4351_v0  ;;  %789 = vrot.lane.b32.xlu1 %v5365_v19, %s5075_s30  ;;  %v4376_v19 = vcombine.high %v1041_v45, %v1045_v6 }
  0x5f   : > { %787 = vrot.lane.b32.xlu0 %v5232_v55, %s5075_s30  ;;  %3042 = vmatprep.mubr.bf16.mxu1 %v4360_v1  ;;  %v4368_v55 = vcombine.high %v1033_v3, %v1037_v29 }
  0x60   : > { %3288 = vmatpush1.bf16.msra.mxu1 %v5294_v32 }
  0x61   : > { %3289 = vmatprep.subr.bf16.mxu1 %v5073_v2 }
  0x62   : > { %793 = vrot.lane.b32.xlu1 %v5383_v34, %s5075_s30  ;;  %v1053_v34 = vld [vmem:[%s6923_s2 + $0x160] sm:$0xff] }
  0x63   : > { %791 = vrot.lane.b32.xlu0 %v5255_v8, %s5075_s30  ;;  %v4367_v8 = vcombine.low %v1033_v3, %v1037_v29  ;;  %v1097_v3 = vld [vmem:[%s6923_s2 + $0x2c0] sm:$0xff] }
  0x66   : > { %3043 = vmatmul.mubr.bf16.gmra.mrb[8].mxu1 %v4359_v41  ;;  %797 = vrot.lane.b32.xlu1 %v5401_v46, %s5075_s30  ;;  %v4375_v46 = vcombine.low %v1041_v45, %v1045_v6 }
  0x67   : > { %795 = vrot.lane.b32.xlu0 %v5280_v20, %s5075_s30  ;;  %3050 = vmatprep.mubr.bf16.mxu1 %v4368_v55  ;;  %v1049_v20 = vld [vmem:[%s6923_s2 + $0x140] sm:$0xff] }
  0x68   : > { %v4384_v56 = vcombine.high %v1049_v20, %v1053_v34 }
  0x6a   : > { %936 = vrot.lane.b32.xlu1 %v5329_v60, %s5076_s5 }
  0x6b   : > { %934 = vrot.lane.b32.xlu0 %v5406_v48, %s5076_s5 }
  0x6e   : > { %3051 = vmatmul.mubr.bf16.gmra.mrb[12].mxu1 %v4367_v8  ;;  %801 = vrot.lane.b32.xlu1 %v5419_v58, %s5075_s30  ;;  %v4383_v58 = vcombine.low %v1049_v20, %v1053_v34  ;;  %v1105_v8 = vld [vmem:[%s6923_s2 + $0x300] sm:$0xff] }
  0x6f   : > { %3058 = vmatprep.mubr.bf16.mxu1 %v4376_v19  ;;  %799 = vrot.lane.b32.xlu0 %v5298_v33, %s5075_s30  ;;  %v1057_v33 = vld [vmem:[%s6923_s2 + $0x180] sm:$0xff] }
  0x70   : > { %v4392_v59 = vcombine.high %v1057_v33, %v1061_v57  ;;  %v4391_v9 = vcombine.low %v1057_v33, %v1061_v57  ;;  %v1117_v57 = vld [vmem:[%s6923_s2 + $0x360] sm:$0xff] }
  0x72   : > { %940 = vrot.lane.b32.xlu1 %v5336_v62, %s5076_s5 }
  0x73   : > { %938 = vrot.lane.b32.xlu0 %v5424_v61, %s5076_s5 }
  0x76   : > { %3059 = vmatmul.mubr.bf16.gmra.mrb[16].mxu1 %v4375_v46  ;;  %805 = vrot.lane.b32.xlu1 %v5435_v13, %s5075_s30  ;;  %v1073_v13 = vld [vmem:[%s6923_s2 + $0x200] sm:$0xff] }
  0x77   : > { %3066 = vmatprep.mubr.bf16.mxu1 %v4384_v56  ;;  %803 = vrot.lane.b32.xlu0 %v5320_v49, %s5075_s30  ;;  %v1065_v49 = vld [vmem:[%s6923_s2 + $0x1c0] sm:$0xff] }
  0x78   : > { %v4400_v12 = vcombine.high %v1065_v49, %v1069_v4  ;;  %v4399_v17 = vcombine.low %v1065_v49, %v1069_v4 }
  0x7a   : > { %944 = vrot.lane.b32.xlu1 %v5354_v15, %s5076_s5 }
  0x7b   : > { %942 = vrot.lane.b32.xlu0 %v5440_v16, %s5076_s5 }
  0x7e   : > { %3067 = vmatmul.mubr.bf16.gmra.mrb[20].mxu1 %v4383_v58  ;;  %809 = vrot.lane.b32.xlu1 %v5451_v24, %s5075_s30 }
  0x7f   : > { %3074 = vmatprep.mubr.bf16.mxu1 %v4392_v59  ;;  %807 = vrot.lane.b32.xlu0 %v5348_v10, %s5075_s30 }
  0x82   : > { %948 = vrot.lane.b32.xlu1 %v5202_v40, %s5076_s5  ;;  %v1077_v40 = vld [vmem:[%s6923_s2 + $0x220] sm:$0xff] }
  0x83   : > { %946 = vrot.lane.b32.xlu0 %v5180_v28, %s5076_s5  ;;  %v4408_v28 = vcombine.high %v1073_v13, %v1077_v40 }
  0x86   : > { %3075 = vmatmul.mubr.bf16.gmra.mrb[24].mxu1 %v4391_v9  ;;  %813 = vrot.lane.b32.xlu1 %v5473_v38, %s5075_s30  ;;  %v4407_v38 = vcombine.low %v1073_v13, %v1077_v40  ;;  %v1121_v13 = vld [vmem:[%s6923_s2 + $0x380] sm:$0xff] }
  0x87   : > { %3082 = vmatprep.mubr.bf16.mxu1 %v4400_v12  ;;  %811 = vrot.lane.b32.xlu0 %v5370_v23, %s5075_s30  ;;  %v1125_v40 = vld [vmem:[%s6923_s2 + $0x3a0] sm:$0xff] }
  0x88   : > { %v836_v10 = vpop.permute.xlu1 %835 }
  0x89   : > { %v832_v14 = vpop.permute.xlu0 %831 }
  0x8a   : > { %952 = vrot.lane.b32.xlu1 %v5194_v35, %s5076_s5  ;;  %v1081_v35 = vld [vmem:[%s6923_s2 + $0x240] sm:$0xff] }
  0x8b   : > { %950 = vrot.lane.b32.xlu0 %v5171_v22, %s5076_s5  ;;  %v1085_v22 = vld [vmem:[%s6923_s2 + $0x260] sm:$0xff] }
  0x8c   : > { %v838_v23 = vpop.permute.xlu1 %837  ;;  %v4416_v39 = vcombine.high %v1081_v35, %v1085_v22 }
  0x8d   : > { %v834_v21 = vpop.permute.xlu0 %833  ;;  %v870_v27 = vsel %vm855_vm6, %v836_v10, %v838_v23 }
  0x8e   : > { %3083 = vmatmul.mubr.bf16.gmra.mrb[28].mxu1 %v4399_v17  ;;  %v869_v24 = vsel %vm855_vm6, %v832_v14, %v834_v21  ;;  %817 = vrot.lane.b32.xlu1 %v5487_v44, %s5075_s30 }
  0x8f   : > { %3573 = vmatpush1.bf16.msra.mxu0 %v869_v24  ;;  %3090 = vmatprep.mubr.bf16.mxu1 %v4408_v28  ;;  %v4456_v28 = vcombine.high %v1121_v13, %v1125_v40 }
  0x90   : > { %v842_v25 = vpop.permute.xlu1 %841  ;;  %3574 = vmatprep.subr.bf16.mxu0 %v5073_v2  ;;  %815 = vrot.lane.b32.xlu0 %v5388_v37, %s5075_s30 }
  0x91   : > { %v840_v26 = vpop.permute.xlu0 %839 }
  0x92   : > { %956 = vrot.lane.b32.xlu1 %v5221_v50, %s5076_s5  ;;  %v871_v44 = vsel %vm855_vm6, %v840_v26, %v842_v25  ;;  %v1133_v26 = vld [vmem:[%s6923_s2 + $0x3e0] sm:$0xff] }
  0x93   : > { %3575 = vmatpush1.bf16.msra.mxu0 %v870_v27 }
  0x94   : > { %v846_v43 = vpop.permute.xlu1 %845  ;;  %3576 = vmatprep.subr.bf16.mxu0 %v5073_v2  ;;  %954 = vrot.lane.b32.xlu0 %v5228_v54, %s5076_s5  ;;  %v1093_v54 = vld [vmem:[%s6923_s2 + $0x2a0] sm:$0xff] }
  0x95   : > { %v844_v47 = vpop.permute.xlu0 %843  ;;  %v4424_v52 = vcombine.high %v1089_v51, %v1093_v54 }
  0x96   : > { %3091 = vmatmul.mubr.bf16.gmra.mrb[32].mxu1 %v4407_v38  ;;  %821 = vrot.lane.b32.xlu1 %v5329_v60, %s5075_s30  ;;  %v872_v50 = vsel %vm855_vm6, %v844_v47, %v846_v43  ;;  %v4415_v60 = vcombine.low %v1081_v35, %v1085_v22  ;;  %v1129_v22 = vld [vmem:[%s6923_s2 + $0x3c0] sm:$0xff]  ;;  %v4455_v38 = vcombine.low %v1121_v13, %v1125_v40  ;;  %v1047_v13 = vld [vmem:[%s6923_s2 + $0x130] sm:$0xff] }
  0x97   : > { %3577 = vmatpush1.bf16.msra.mxu0 %v871_v44  ;;  %3098 = vmatprep.mubr.bf16.mxu1 %v4416_v39  ;;  %v4464_v39 = vcombine.high %v1129_v22, %v1133_v26 }
  0x98   : > { %v850_v37 = vpop.permute.xlu1 %849  ;;  %3578 = vmatprep.subr.bf16.mxu0 %v5073_v2  ;;  %819 = vrot.lane.b32.xlu0 %v5406_v48, %s5075_s30 }
  0x99   : > { %v848_v11 = vpop.permute.xlu0 %847 }
  0x9a   : > { %960 = vrot.lane.b32.xlu1 %v5246_v63, %s5076_s5  ;;  %v873_v0 = vsel %vm855_vm6, %v848_v11, %v850_v37 }
  0x9b   : > { %3579 = vmatpush1.bf16.msra.mxu0 %v872_v50 }
  0x9c   : > { %v854_v53 = vpop.permute.xlu1 %853  ;;  %3580 = vmatprep.subr.bf16.mxu0 %v5073_v2  ;;  %958 = vrot.lane.b32.xlu0 %v5251_v7, %s5076_s5  ;;  %v1101_v7 = vld [vmem:[%s6923_s2 + $0x2e0] sm:$0xff] }
  0x9d   : > { %v852_v1 = vpop.permute.xlu0 %851  ;;  %v4432_v41 = vcombine.high %v1097_v3, %v1101_v7 }
  0x9e   : > { %3099 = vmatmul.mubr.bf16.gmra.mrb[36].mxu1 %v4415_v60  ;;  %825 = vrot.lane.b32.xlu1 %v5336_v62, %s5075_s30  ;;  %v874_v63 = vsel %vm855_vm6, %v852_v1, %v854_v53  ;;  %v4423_v62 = vcombine.low %v1089_v51, %v1093_v54  ;;  %v1019_v51 = vld [vmem:[%s6923_s2 + $0x50] sm:$0xff]  ;;  %v1137_v60 = vld [vmem:[%s6923_s2 + $0x400] sm:$0xff] }
  0x9f   : > { %3581 = vmatpush1.bf16.msra.mxu0 %v873_v0  ;;  %3106 = vmatprep.mubr.bf16.mxu1 %v4424_v52  ;;  %v1023_v54 = vld [vmem:[%s6923_s2 + $0x70] sm:$0xff]  ;;  %v1141_v52 = vld [vmem:[%s6923_s2 + $0x420] sm:$0xff]  ;;  %v4463_v0 = vcombine.low %v1129_v22, %v1133_v26 }
  0xa0   : > { %v897_v48 = vpop.permute.xlu1 %896  ;;  %3582 = vmatprep.subr.bf16.mxu0 %v5073_v2  ;;  %823 = vrot.lane.b32.xlu0 %v5424_v61, %s5075_s30  ;;  %v4356_v1 = vcombine.high %v1019_v51, %v1023_v54  ;;  %v1169_v26 = vld [vmem:[%s6923_s2 + $0x500] sm:$0xff] }
  0xa1   : > { %v895_v29 = vpop.permute.xlu0 %894 }
  0xa2   : > { %964 = vrot.lane.b32.xlu1 %v5271_v5, %s5076_s5  ;;  %v971_v45 = vsel %vm970_vm7, %v895_v29, %v897_v48 }
  0xa3   : > { %3583 = vmatpush1.bf16.msra.mxu0 %v874_v63  ;;  %v4472_v63 = vcombine.high %v1137_v60, %v1141_v52 }
  0xa4   : > { %v901_v55 = vpop.permute.xlu1 %900  ;;  %3584 = vmatprep.subr.bf16.mxu0 %v5073_v2  ;;  %962 = vrot.lane.b32.xlu0 %v5275_v18, %s5076_s5  ;;  %v1109_v18 = vld [vmem:[%s6923_s2 + $0x320] sm:$0xff] }
  0xa5   : > { %v899_v6 = vpop.permute.xlu0 %898  ;;  %v4440_v20 = vcombine.high %v1105_v8, %v1109_v18  ;;  %v4439_v59 = vcombine.low %v1105_v8, %v1109_v18  ;;  %v4480_v8 = vcombine.high %v1145_v31, %v1149_v36 }
  0xa6   : > { %3107 = vmatmul.mubr.bf16.gmra.mrb[40].mxu1 %v4423_v62  ;;  %829 = vrot.lane.b32.xlu1 %v5354_v15, %s5075_s30  ;;  %v972_v5 = vsel %vm970_vm7, %v899_v6, %v901_v55  ;;  %v4431_v15 = vcombine.low %v1097_v3, %v1101_v7  ;;  %v1027_v62 = vld [vmem:[%s6923_s2 + $0x90] sm:$0xff]  ;;  %v4355_v6 = vcombine.low %v1019_v51, %v1023_v54 }
  0xa7   : > { %3585 = vmatpush1.bf16.msra.mxu0 %v971_v45  ;;  %3114 = vmatprep.mubr.bf16.mxu1 %v4432_v41  ;;  %v1031_v41 = vld [vmem:[%s6923_s2 + $0xb0] sm:$0xff]  ;;  %v4471_v45 = vcombine.low %v1137_v60, %v1141_v52 }
  0xa8   : > { %v905_v61 = vpop.permute.xlu1 %904  ;;  %3586 = vmatprep.subr.bf16.mxu0 %v5073_v2  ;;  %827 = vrot.lane.b32.xlu0 %v5440_v16, %s5075_s30 }
  0xa9   : > { %v903_v19 = vpop.permute.xlu0 %902 }
  0xaa   : > { %968 = vrot.lane.b32.xlu1 %v5291_v30, %s5076_s5  ;;  %v973_v46 = vsel %vm970_vm7, %v903_v19, %v905_v61  ;;  %v1113_v30 = vld [vmem:[%s6923_s2 + $0x340] sm:$0xff]  ;;  %v4364_v61 = vcombine.high %v1027_v62, %v1031_v41 }
  0xab   : > { %3587 = vmatpush1.bf16.msra.mxu0 %v972_v5  ;;  %v4447_v17 = vcombine.low %v1113_v30, %v1117_v57 }
  0xac   : > { %v909_v34 = vpop.permute.xlu1 %908  ;;  %3588 = vmatprep.subr.bf16.mxu0 %v5073_v2  ;;  %966 = vrot.lane.b32.xlu0 %v5294_v32, %s5076_s5  ;;  %v4448_v32 = vcombine.high %v1113_v30, %v1117_v57  ;;  %v4479_v30 = vcombine.low %v1145_v31, %v1149_v36  ;;  %v4363_v57 = vcombine.low %v1027_v62, %v1031_v41 }
  0xad   : > { %v907_v56 = vpop.permute.xlu0 %906 }
  0xae   : > { %3115 = vmatmul.mubr.bf16.gmra.mrb[44].mxu1 %v4431_v15  ;;  %v974_v33 = vsel %vm970_vm7, %v907_v56, %v909_v34  ;;  %v1157_v34 = vld [vmem:[%s6923_s2 + $0x4a0] sm:$0xff]  ;;  %v1035_v56 = vld [vmem:[%s6923_s2 + $0xd0] sm:$0xff] }
  0xaf   : > { %3589 = vmatpush1.bf16.msra.mxu0 %v973_v46  ;;  %3122 = vmatprep.mubr.bf16.mxu1 %v4440_v20  ;;  %v1153_v20 = vld [vmem:[%s6923_s2 + $0x480] sm:$0xff] }
  0xb0   : > { %v913_v16 = vpop.permute.xlu1 %912  ;;  %3590 = vmatprep.subr.bf16.mxu0 %v5073_v2 }
  0xb1   : > { %v911_v58 = vpop.permute.xlu0 %910 }
  0xb2   : > { %v975_v4 = vsel %vm970_vm7, %v911_v58, %v913_v16  ;;  %v1039_v16 = vld [vmem:[%s6923_s2 + $0xf0] sm:$0xff]  ;;  %v4488_v58 = vcombine.high %v1153_v20, %v1157_v34 }
  0xb3   : > { %3591 = vmatpush1.bf16.msra.mxu0 %v974_v33 }
  0xb4   : > { %v917_v49 = vpop.permute.xlu1 %916  ;;  %3592 = vmatprep.subr.bf16.mxu0 %v5073_v2 }
  0xb5   : > { %v915_v9 = vpop.permute.xlu0 %914 }
  0xb6   : > { %3123 = vmatmul.mubr.bf16.gmra.mrb[48].mxu1 %v4439_v59  ;;  %v976_v10 = vsel %vm970_vm7, %v915_v9, %v917_v49  ;;  %v1161_v9 = vld [vmem:[%s6923_s2 + $0x4c0] sm:$0xff] }
  0xb7   : > { %3593 = vmatpush1.bf16.msra.mxu0 %v975_v4  ;;  %3130 = vmatprep.mubr.bf16.mxu1 %v4448_v32  ;;  %v4372_v32 = vcombine.high %v1035_v56, %v1039_v16 }
  0xb8   : > { %v921_v12 = vpop.permute.xlu1 %920  ;;  %3594 = vmatprep.subr.bf16.mxu0 %v5073_v2 }
  0xb9   : > { %v919_v14 = vpop.permute.xlu0 %918 }
  0xba   : > { %v977_v21 = vsel %vm970_vm7, %v919_v14, %v921_v12  ;;  %v1165_v12 = vld [vmem:[%s6923_s2 + $0x4e0] sm:$0xff] }
  0xbb   : > { %3595 = vmatpush1.bf16.msra.mxu0 %v976_v10  ;;  %v1043_v10 = vld [vmem:[%s6923_s2 + $0x110] sm:$0xff] }
  0xbc   : > { %v925_v23 = vpop.permute.xlu1 %924  ;;  %3596 = vmatprep.subr.bf16.mxu0 %v5073_v2 }
  0xbd   : > { %v923_v24 = vpop.permute.xlu0 %922 }
  0xbe   : > { %3131 = vmatmul.mubr.bf16.gmra.mrb[52].mxu1 %v4447_v17  ;;  %v978_v35 = vsel %vm970_vm7, %v923_v24, %v925_v23  ;;  %v4487_v17 = vcombine.low %v1153_v20, %v1157_v34  ;;  %v4380_v24 = vcombine.high %v1043_v10, %v1047_v13 }
  0xbf   : > { %3597 = vmatpush1.bf16.msra.mxu0 %v977_v21  ;;  %3138 = vmatprep.mubr.bf16.mxu1 %v4456_v28  ;;  %v4371_v28 = vcombine.low %v1035_v56, %v1039_v16  ;;  %v4496_v21 = vcombine.high %v1161_v9, %v1165_v12 }
  0xc0   : > { %v929_v25 = vpop.permute.xlu1 %928  ;;  %3598 = vmatprep.subr.bf16.mxu0 %v5073_v2 }
  0xc1   : > { %v927_v27 = vpop.permute.xlu0 %926 }
  0xc2   : > { %v979_v44 = vsel %vm970_vm7, %v927_v27, %v929_v25  ;;  %v1173_v27 = vld [vmem:[%s6923_s2 + $0x520] sm:$0xff] }
  0xc3   : > { %3599 = vmatpush1.bf16.msra.mxu0 %v978_v35  ;;  %v4504_v51 = vcombine.high %v1169_v26, %v1173_v27 }
  0xc4   : > { %v933_v43 = vpop.permute.xlu1 %932  ;;  %3600 = vmatprep.subr.bf16.mxu0 %v5073_v2 }
  0xc5   : > { %v931_v47 = vpop.permute.xlu0 %930 }
  0xc6   : > { %3139 = vmatmul.mubr.bf16.gmra.mrb[56].mxu1 %v4455_v38  ;;  %v980_v50 = vsel %vm970_vm7, %v931_v47, %v933_v43  ;;  %v1051_v38 = vld [vmem:[%s6923_s2 + $0x150] sm:$0xff]  ;;  %v4495_v47 = vcombine.low %v1161_v9, %v1165_v12 }
  0xc7   : > { %3601 = vmatpush1.bf16.msra.mxu0 %v979_v44  ;;  %3146 = vmatprep.mubr.bf16.mxu1 %v4464_v39  ;;  %v1055_v39 = vld [vmem:[%s6923_s2 + $0x170] sm:$0xff] }
  0xc8   : > { %v782_v37 = vpop.permute.xlu1 %781  ;;  %3602 = vmatprep.subr.bf16.mxu0 %v5073_v2  ;;  %v4388_v54 = vcombine.high %v1051_v38, %v1055_v39 }
  0xc9   : > { %v780_v11 = vpop.permute.xlu0 %779 }
  0xca   : > { %v856_v53 = vsel %vm855_vm6, %v780_v11, %v782_v37  ;;  %v4379_v37 = vcombine.low %v1043_v10, %v1047_v13 }
  0xcb   : > { %3290 = vmatpush1.bf16.msra.mxu1 %v856_v53  ;;  %3603 = vmatpush1.bf16.msra.mxu0 %v980_v50  ;;  %v1177_v53 = vld [vmem:[%s6923_s2 + $0x540] sm:$0xff] }
  0xcc   : > { %v786_v48 = vpop.permute.xlu1 %785  ;;  %3291 = vmatprep.subr.bf16.mxu1 %v5073_v2  ;;  %3861 = vmatprep.subr.bf16.mxu0 %v5073_v2 }
  0xcd   : > { %v784_v3 = vpop.permute.xlu0 %783 }
  0xce   : > { %v857_v7 = vsel %vm855_vm6, %v784_v3, %v786_v48  ;;  %3147 = vmatmul.mubr.bf16.gmra.mrb[60].mxu1 %v4463_v0  ;;  %3605 = vmatmul.mubr.bf16.vlgmr.msra.gmra.mrb[0].mxu0 %v4347_v42  ;;  %v1181_v0 = vld [vmem:[%s6923_s2 + $0x560] sm:$0xff]  ;;  %v1063_v48 = vld [vmem:[%s6923_s2 + $0x1b0] sm:$0xff] }
  0xcf   : > { %3292 = vmatpush1.bf16.msra.mxu1 %v857_v7  ;;  %3612 = vmatprep.mubr.bf16.mxu0 %v4356_v1  ;;  %v1059_v1 = vld [vmem:[%s6923_s2 + $0x190] sm:$0xff]  ;;  %v4387_v7 = vcombine.low %v1051_v38, %v1055_v39  ;;  %v4512_v41 = vcombine.high %v1177_v53, %v1181_v0 }
  0xd0   : > { %v790_v29 = vpop.permute.xlu1 %789  ;;  %3293 = vmatprep.subr.bf16.mxu1 %v5073_v2  ;;  %3154 = vmatprep.mubr.bf16.mxu1 %v4472_v63 }
  0xd1   : > { %v788_v55 = vpop.permute.xlu0 %787 }
  0xd2   : > { %v858_v42 = vsel %vm855_vm6, %v788_v55, %v790_v29  ;;  %v4503_v29 = vcombine.low %v1169_v26, %v1173_v27  ;;  %v4396_v55 = vcombine.high %v1059_v1, %v1063_v48 }
  0xd3   : > { %3294 = vmatpush1.bf16.msra.mxu1 %v858_v42 }
  0xd4   : > { %v794_v5 = vpop.permute.xlu1 %793  ;;  %3295 = vmatprep.subr.bf16.mxu1 %v5073_v2 }
  0xd5   : > { %v792_v18 = vpop.permute.xlu0 %791 }
  0xd6   : > { %v859_v19 = vsel %vm855_vm6, %v792_v18, %v794_v5  ;;  %3155 = vmatmul.mubr.bf16.gmra.mrb[64].mxu1 %v4471_v45  ;;  %3613 = vmatmul.mubr.bf16.gmra.mrb[4].mxu0 %v4355_v6  ;;  %v1185_v45 = vld [vmem:[%s6923_s2 + $0x580] sm:$0xff]  ;;  %v1071_v5 = vld [vmem:[%s6923_s2 + $0x1f0] sm:$0xff] }
  0xd7   : > { %3296 = vmatpush1.bf16.msra.mxu1 %v859_v19  ;;  %3620 = vmatprep.mubr.bf16.mxu0 %v4364_v61  ;;  %v1189_v6 = vld [vmem:[%s6923_s2 + $0x5a0] sm:$0xff]  ;;  %v1067_v61 = vld [vmem:[%s6923_s2 + $0x1d0] sm:$0xff]  ;;  %v4511_v19 = vcombine.low %v1177_v53, %v1181_v0 }
  0xd8   : > { %v798_v15 = vpop.permute.xlu1 %797  ;;  %3297 = vmatprep.subr.bf16.mxu1 %v5073_v2  ;;  %3162 = vmatprep.mubr.bf16.mxu1 %v4480_v8  ;;  %v4520_v34 = vcombine.high %v1185_v45, %v1189_v6 }
  0xd9   : > { %v796_v46 = vpop.permute.xlu0 %795 }
  0xda   : > { %v860_v33 = vsel %vm855_vm6, %v796_v46, %v798_v15  ;;  %v4395_v15 = vcombine.low %v1059_v1, %v1063_v48  ;;  %v4404_v46 = vcombine.high %v1067_v61, %v1071_v5 }
  0xdb   : > { %3298 = vmatpush1.bf16.msra.mxu1 %v860_v33 }
  0xdc   : > { %v937_v59 = vpop.permute.xlu1 %936  ;;  %3299 = vmatprep.subr.bf16.mxu1 %v5073_v2 }
  0xdd   : > { %v935_v49 = vpop.permute.xlu0 %934 }
  0xde   : > { %v981_v4 = vsel %vm970_vm7, %v935_v49, %v937_v59  ;;  %3163 = vmatmul.mubr.bf16.gmra.mrb[68].mxu1 %v4479_v30  ;;  %3621 = vmatmul.mubr.bf16.gmra.mrb[8].mxu0 %v4363_v57  ;;  %v1193_v30 = vld [vmem:[%s6923_s2 + $0x5c0] sm:$0xff]  ;;  %v1079_v59 = vld [vmem:[%s6923_s2 + $0x230] sm:$0xff]  ;;  %v4519_v49 = vcombine.low %v1185_v45, %v1189_v6 }
  0xdf   : > { %3862 = vmatpush1.bf16.msra.mxu0 %v981_v4  ;;  %3170 = vmatprep.mubr.bf16.mxu1 %v4488_v58  ;;  %v1197_v57 = vld [vmem:[%s6923_s2 + $0x5e0] sm:$0xff]  ;;  %v1075_v58 = vld [vmem:[%s6923_s2 + $0x210] sm:$0xff]  ;;  %v4403_v4 = vcombine.low %v1067_v61, %v1071_v5 }
  0xe0   : > { %3628 = vmatprep.mubr.bf16.mxu0 %v4372_v32  ;;  %v802_v40 = vpop.permute.xlu1 %801  ;;  %3863 = vmatprep.subr.bf16.mxu0 %v5073_v2  ;;  %v4528_v12 = vcombine.high %v1193_v30, %v1197_v57  ;;  %v4412_v10 = vcombine.high %v1075_v58, %v1079_v59 }
  0xe1   : > { %v800_v14 = vpop.permute.xlu0 %799 }
  0xe2   : > { %v861_v23 = vsel %vm855_vm6, %v800_v14, %v802_v40 }
  0xe3   : > { %3300 = vmatpush1.bf16.msra.mxu1 %v861_v23  ;;  %v1205_v23 = vld [vmem:[%s6923_s2 + $0x620] sm:$0xff] }
  0xe4   : > { %v941_v25 = vpop.permute.xlu1 %940  ;;  %3301 = vmatprep.subr.bf16.mxu1 %v5073_v2 }
  0xe5   : > { %v939_v35 = vpop.permute.xlu0 %938 }
  0xe6   : > { %3171 = vmatmul.mubr.bf16.gmra.mrb[72].mxu1 %v4487_v17  ;;  %3629 = vmatmul.mubr.bf16.gmra.mrb[12].mxu0 %v4371_v28  ;;  %v982_v22 = vsel %vm970_vm7, %v939_v35, %v941_v25  ;;  %v1201_v17 = vld [vmem:[%s6923_s2 + $0x600] sm:$0xff]  ;;  %v4527_v35 = vcombine.low %v1193_v30, %v1197_v57  ;;  %v1119_v30 = vld [vmem:[%s6923_s2 + $0x370] sm:$0xff] }
  0xe7   : > { %3178 = vmatprep.mubr.bf16.mxu1 %v4496_v21  ;;  %3636 = vmatprep.mubr.bf16.mxu0 %v4380_v24  ;;  %v1083_v21 = vld [vmem:[%s6923_s2 + $0x250] sm:$0xff]  ;;  %v4536_v27 = vcombine.high %v1201_v17, %v1205_v23  ;;  %v1233_v57 = vld [vmem:[%s6923_s2 + $0x700] sm:$0xff] }
  0xe8   : > { %3864 = vmatpush1.bf16.msra.mxu0 %v982_v22  ;;  %v806_v43 = vpop.permute.xlu1 %805  ;;  %v1087_v24 = vld [vmem:[%s6923_s2 + $0x270] sm:$0xff]  ;;  %v4411_v22 = vcombine.low %v1075_v58, %v1079_v59  ;;  %v1237_v58 = vld [vmem:[%s6923_s2 + $0x720] sm:$0xff] }
  0xe9   : > { %v804_v44 = vpop.permute.xlu0 %803  ;;  %3865 = vmatprep.subr.bf16.mxu0 %v5073_v2  ;;  %v4420_v38 = vcombine.high %v1083_v21, %v1087_v24 }
  0xea   : > { %v862_v50 = vsel %vm855_vm6, %v804_v44, %v806_v43 }
  0xeb   : > { %3302 = vmatpush1.bf16.msra.mxu1 %v862_v50  ;;  %v1213_v50 = vld [vmem:[%s6923_s2 + $0x660] sm:$0xff] }
  0xec   : > { %v945_v11 = vpop.permute.xlu1 %944  ;;  %3303 = vmatprep.subr.bf16.mxu1 %v5073_v2 }
  0xed   : > { %v943_v60 = vpop.permute.xlu0 %942 }
  0xee   : > { %3179 = vmatmul.mubr.bf16.gmra.mrb[76].mxu1 %v4495_v47  ;;  %3637 = vmatmul.mubr.bf16.gmra.mrb[16].mxu0 %v4379_v37  ;;  %v983_v52 = vsel %vm970_vm7, %v943_v60, %v945_v11  ;;  %v1209_v47 = vld [vmem:[%s6923_s2 + $0x640] sm:$0xff]  ;;  %v4419_v60 = vcombine.low %v1083_v21, %v1087_v24 }
  0xef   : > { %3186 = vmatprep.mubr.bf16.mxu1 %v4504_v51  ;;  %3644 = vmatprep.mubr.bf16.mxu0 %v4388_v54  ;;  %v1091_v51 = vld [vmem:[%s6923_s2 + $0x290] sm:$0xff]  ;;  %v4544_v0 = vcombine.high %v1209_v47, %v1213_v50  ;;  %v1269_v24 = vld [vmem:[%s6924_s3 + $0x20] sm:$0xff] }
  0xf0   : > { %3866 = vmatpush1.bf16.msra.mxu0 %v983_v52  ;;  %v810_v63 = vpop.permute.xlu1 %809  ;;  %v1095_v54 = vld [vmem:[%s6923_s2 + $0x2b0] sm:$0xff]  ;;  %v4535_v52 = vcombine.low %v1201_v17, %v1205_v23  ;;  %v4567_v17 = vcombine.low %v1233_v57, %v1237_v58 }
  0xf1   : > { %v808_v3 = vpop.permute.xlu0 %807  ;;  %3867 = vmatprep.subr.bf16.mxu0 %v5073_v2  ;;  %v4428_v1 = vcombine.high %v1091_v51, %v1095_v54 }
  0xf2   : > { %v863_v62 = vsel %vm855_vm6, %v808_v3, %v810_v63 }
  0xf3   : > { %3304 = vmatpush1.bf16.msra.mxu1 %v863_v62  ;;  %v1221_v62 = vld [vmem:[%s6923_s2 + $0x6a0] sm:$0xff] }
  0xf4   : > { %v949_v31 = vpop.permute.xlu1 %948  ;;  %3305 = vmatprep.subr.bf16.mxu1 %v5073_v2 }
  0xf5   : > { %v947_v36 = vpop.permute.xlu0 %946 }
  0xf6   : > { %3645 = vmatmul.mubr.bf16.gmra.mrb[20].mxu0 %v4387_v7  ;;  %3187 = vmatmul.mubr.bf16.gmra.mrb[80].mxu1 %v4503_v29  ;;  %v984_v42 = vsel %vm970_vm7, %v947_v36, %v949_v31  ;;  %v1217_v7 = vld [vmem:[%s6923_s2 + $0x680] sm:$0xff]  ;;  %v4543_v36 = vcombine.low %v1209_v47, %v1213_v50  ;;  %v1271_v50 = vld [vmem:[%s6924_s3 + $0x30] sm:$0xff] }
  0xf7   : > { %3194 = vmatprep.mubr.bf16.mxu1 %v4512_v41  ;;  %3652 = vmatprep.mubr.bf16.mxu0 %v4396_v55  ;;  %v1099_v41 = vld [vmem:[%s6923_s2 + $0x2d0] sm:$0xff]  ;;  %v4552_v6 = vcombine.high %v1217_v7, %v1221_v62 }
  0xf8   : > { %v814_v8 = vpop.permute.xlu1 %813  ;;  %3868 = vmatpush1.bf16.msra.mxu0 %v984_v42  ;;  %v1103_v55 = vld [vmem:[%s6923_s2 + $0x2f0] sm:$0xff]  ;;  %v4427_v42 = vcombine.low %v1091_v51, %v1095_v54  ;;  %v1272_v51 = vld [vmem:[%s6924_s3 + $0x38] sm:$0xff] }
  0xf9   : > { %v812_v18 = vpop.permute.xlu0 %811  ;;  %3869 = vmatprep.subr.bf16.mxu0 %v5073_v2  ;;  %v4436_v61 = vcombine.high %v1099_v41, %v1103_v55  ;;  %v1139_v54 = vld [vmem:[%s6923_s2 + $0x410] sm:$0xff] }
  0xfa   : > { %v864_v20 = vsel %vm855_vm6, %v812_v18, %v814_v8  ;;  %v1107_v8 = vld [vmem:[%s6923_s2 + $0x310] sm:$0xff]  ;;  %v1225_v18 = vld [vmem:[%s6923_s2 + $0x6c0] sm:$0xff] }
  0xfb   : > { %3306 = vmatpush1.bf16.msra.mxu1 %v864_v20  ;;  %v4435_v20 = vcombine.low %v1099_v41, %v1103_v55  ;;  %v1147_v41 = vld [vmem:[%s6923_s2 + $0x450] sm:$0xff] }
  0xfc   : > { %v953_v56 = vpop.permute.xlu1 %952  ;;  %3307 = vmatprep.subr.bf16.mxu1 %v5073_v2  ;;  %v1151_v55 = vld [vmem:[%s6923_s2 + $0x470] sm:$0xff] }
  0xfd   : > { %v951_v16 = vpop.permute.xlu0 %950 }
  0xfe   : > { %3195 = vmatmul.mubr.bf16.gmra.mrb[84].mxu1 %v4511_v19  ;;  %3653 = vmatmul.mubr.bf16.gmra.mrb[24].mxu0 %v4395_v15  ;;  %v985_v33 = vsel %vm970_vm7, %v951_v16, %v953_v56  ;;  %v1229_v19 = vld [vmem:[%s6923_s2 + $0x6e0] sm:$0xff]  ;;  %v4551_v15 = vcombine.low %v1217_v7, %v1221_v62  ;;  %v1266_v16 = vld [vmem:[%s6924_s3 + $0x8] sm:$0xff] }
  0xff   : > { %3202 = vmatprep.mubr.bf16.mxu1 %v4520_v34  ;;  %3660 = vmatprep.mubr.bf16.mxu0 %v4404_v46  ;;  %v4560_v46 = vcombine.high %v1225_v18, %v1229_v19  ;;  %v1265_v56 = vld [vmem:[%s6924_s3] sm:$0xff]  ;;  %v4559_v59 = vcombine.low %v1225_v18, %v1229_v19  ;;  %v1274_v7 = vld [vmem:[%s6924_s3 + $0x48] sm:$0xff]  ;;  %v1159_v18 = vld [vmem:[%s6923_s2 + $0x4b0] sm:$0xff] }
 0x100   : > { %v818_v32 = vpop.permute.xlu1 %817  ;;  %3870 = vmatpush1.bf16.msra.mxu0 %v985_v33  ;;  %v1115_v33 = vld [vmem:[%s6923_s2 + $0x350] sm:$0xff]  ;;  %1331 = vperm.xlu0 %5047, %v1265_v56   ;;  %v1014_v62 = vld [vmem:[%s6923_s2 + $0x28] sm:$0xff] }
 0x101   : > { %3871 = vmatprep.subr.bf16.mxu0 %v5073_v2  ;;  %1336 = vperm.xlu1 %5048, %v1266_v16   ;;  %v1278_v56 = vld [vmem:[%s6924_s3 + $0x68] sm:$0xff] }
 0x102   : > { %v816_v9 = vpop.permute.xlu0 %815  ;;  %v1026_v16 = vld [vmem:[%s6923_s2 + $0x88] sm:$0xff] }
 0x103   : > { %v865_v13 = vsel %vm855_vm6, %v816_v9, %v818_v32  ;;  %v1267_v9 = vld [vmem:[%s6924_s3 + $0x10] sm:$0xff] }
 0x104   : > { %v957_v40 = vpop.permute.xlu1 %956  ;;  %3308 = vmatpush1.bf16.msra.mxu1 %v865_v13  ;;  %v1127_v13 = vld [vmem:[%s6923_s2 + $0x3b0] sm:$0xff] }
 0x105   : > { %3309 = vmatprep.subr.bf16.mxu1 %v5073_v2  ;;  %1341 = vperm.xlu1 %5048, %v1267_v9   ;;  %v1280_v9 = vld [vmem:[%s6924_s3 + $0x78] sm:$0xff] }
 0x106   : > { %3203 = vmatmul.mubr.bf16.gmra.mrb[88].mxu1 %v4519_v49  ;;  %3661 = vmatmul.mubr.bf16.gmra.mrb[28].mxu0 %v4403_v4  ;;  %v955_v14 = vpop.permute.xlu0 %954  ;;  %v4452_v49 = vcombine.high %v1115_v33, %v1119_v30  ;;  %v4568_v4 = vcombine.high %v1233_v57, %v1237_v58  ;;  %v1167_v57 = vld [vmem:[%s6923_s2 + $0x4f0] sm:$0xff] }
 0x107   : > { %3210 = vmatprep.mubr.bf16.mxu1 %v4528_v12  ;;  %3668 = vmatprep.mubr.bf16.mxu0 %v4412_v10  ;;  %v986_v28 = vsel %vm970_vm7, %v955_v14, %v957_v40  ;;  %v1268_v12 = vld [vmem:[%s6924_s3 + $0x18] sm:$0xff]  ;;  %v1123_v10 = vld [vmem:[%s6923_s2 + $0x390] sm:$0xff]  ;;  %v1241_v40 = vld [vmem:[%s6923_s2 + $0x740] sm:$0xff] }
 0x108   : > { %v822_v25 = vpop.permute.xlu1 %821  ;;  %3872 = vmatpush1.bf16.msra.mxu0 %v986_v28  ;;  %v1245_v14 = vld [vmem:[%s6923_s2 + $0x760] sm:$0xff]  ;;  %1346 = vperm.xlu0 %5047, %v1268_v12   ;;  %v4451_v28 = vcombine.low %v1115_v33, %v1119_v30  ;;  %v4460_v23 = vcombine.high %v1123_v10, %v1127_v13  ;;  %v1030_v33 = vld [vmem:[%s6923_s2 + $0xa8] sm:$0xff]  ;;  %v1163_v30 = vld [vmem:[%s6923_s2 + $0x4d0] sm:$0xff] }
 0x109   : > { %3873 = vmatprep.subr.bf16.mxu0 %v5073_v2  ;;  %v4576_v21 = vcombine.high %v1241_v40, %v1245_v14  ;;  %1351 = vperm.xlu1 %5048, %v1269_v24   ;;  %v1034_v12 = vld [vmem:[%s6923_s2 + $0xc8] sm:$0xff] }
 0x10a   : > { %v820_v26 = vpop.permute.xlu0 %819  ;;  %v1282_v24 = vld [vmem:[%s6924_s3 + $0x88] sm:$0xff] }
 0x10b   : > { %v866_v39 = vsel %vm855_vm6, %v820_v26, %v822_v25  ;;  %v1270_v25 = vld [vmem:[%s6924_s3 + $0x28] sm:$0xff]  ;;  %v1249_v26 = vld [vmem:[%s6923_s2 + $0x780] sm:$0xff] }
 0x10c   : > { %v961_v43 = vpop.permute.xlu1 %960  ;;  %3310 = vmatpush1.bf16.msra.mxu1 %v866_v39  ;;  %1356 = vperm.xlu0 %5047, %v1270_v25   ;;  %v4459_v39 = vcombine.low %v1123_v10, %v1127_v13  ;;  %v1038_v10 = vld [vmem:[%s6923_s2 + $0xe8] sm:$0xff]  ;;  %v1171_v13 = vld [vmem:[%s6923_s2 + $0x510] sm:$0xff] }
 0x10d   : > { %3311 = vmatprep.subr.bf16.mxu1 %v5073_v2  ;;  %1361 = vperm.xlu1 %5048, %v1271_v50   ;;  %v1042_v25 = vld [vmem:[%s6923_s2 + $0x108] sm:$0xff] }
 0x10e   : > { %3211 = vmatmul.mubr.bf16.gmra.mrb[92].mxu1 %v4527_v35  ;;  %3669 = vmatmul.mubr.bf16.gmra.mrb[32].mxu0 %v4411_v22  ;;  %v959_v44 = vpop.permute.xlu0 %958  ;;  %v1131_v35 = vld [vmem:[%s6923_s2 + $0x3d0] sm:$0xff]  ;;  %v1054_v50 = vld [vmem:[%s6923_s2 + $0x168] sm:$0xff] }
 0x10f   : > { %3218 = vmatprep.mubr.bf16.mxu1 %v4536_v27  ;;  %3676 = vmatprep.mubr.bf16.mxu0 %v4420_v38  ;;  %v987_v37 = vsel %vm970_vm7, %v959_v44, %v961_v43  ;;  %v1135_v22 = vld [vmem:[%s6923_s2 + $0x3f0] sm:$0xff]  ;;  %v1253_v27 = vld [vmem:[%s6923_s2 + $0x7a0] sm:$0xff]  ;;  %v4575_v38 = vcombine.low %v1241_v40, %v1245_v14  ;;  %v4361_v14 = vcombine.low %v1026_v16, %v1030_v33 }
 0x110   : > { %v826_v11 = vpop.permute.xlu1 %825  ;;  %3874 = vmatpush1.bf16.msra.mxu0 %v987_v37  ;;  %v4468_v43 = vcombine.high %v1131_v35, %v1135_v22  ;;  %v4584_v44 = vcombine.high %v1249_v26, %v1253_v27  ;;  %1366 = vperm.xlu0 %5047, %v1272_v51   ;;  %v1175_v40 = vld [vmem:[%s6923_s2 + $0x530] sm:$0xff] }
 0x111   : > { %3875 = vmatprep.subr.bf16.mxu0 %v5073_v2  ;;  %v1187_v51 = vld [vmem:[%s6923_s2 + $0x590] sm:$0xff] }
 0x112   : > { %v824_v53 = vpop.permute.xlu0 %823 }
 0x113   : > { %v867_v48 = vsel %vm855_vm6, %v824_v53, %v826_v11  ;;  %v1261_v53 = vld [vmem:[%s6923_s2 + $0x7e0] sm:$0xff] }
 0x114   : > { %v965_v63 = vpop.permute.xlu1 %964  ;;  %3312 = vmatpush1.bf16.msra.mxu1 %v867_v48  ;;  %1376 = vperm.xlu0 %5047, %v1274_v7   ;;  %v1199_v7 = vld [vmem:[%s6923_s2 + $0x5f0] sm:$0xff] }
 0x115   : > { %3313 = vmatprep.subr.bf16.mxu1 %v5073_v2 }
 0x116   : > { %3677 = vmatmul.mubr.bf16.gmra.mrb[36].mxu0 %v4419_v60  ;;  %3219 = vmatmul.mubr.bf16.gmra.mrb[96].mxu1 %v4535_v52  ;;  %v963_v3 = vpop.permute.xlu0 %962  ;;  %v1143_v60 = vld [vmem:[%s6923_s2 + $0x430] sm:$0xff]  ;;  %v1257_v52 = vld [vmem:[%s6923_s2 + $0x7c0] sm:$0xff] }
 0x117   : > { %3226 = vmatprep.mubr.bf16.mxu1 %v4544_v0  ;;  %3684 = vmatprep.mubr.bf16.mxu0 %v4428_v1  ;;  %v988_v29 = vsel %vm970_vm7, %v963_v3, %v965_v63  ;;  %v4583_v0 = vcombine.low %v1249_v26, %v1253_v27  ;;  %v4467_v1 = vcombine.low %v1131_v35, %v1135_v22  ;;  %v1273_v3 = vld [vmem:[%s6924_s3 + $0x40] sm:$0xff]  ;;  %v1046_v35 = vld [vmem:[%s6923_s2 + $0x128] sm:$0xff]  ;;  %v1179_v22 = vld [vmem:[%s6923_s2 + $0x550] sm:$0xff] }
 0x118   : > { %v830_v31 = vpop.permute.xlu1 %829  ;;  %3876 = vmatpush1.bf16.msra.mxu0 %v988_v29  ;;  %v4476_v48 = vcombine.high %v1139_v54, %v1143_v60  ;;  %v4592_v63 = vcombine.high %v1257_v52, %v1261_v53  ;;  %v1010_v29 = vld [vmem:[%s6923_s2 + $0x8] sm:$0xff]  ;;  %1371 = vperm.xlu1 %5048, %v1273_v3   ;;  %v1183_v26 = vld [vmem:[%s6923_s2 + $0x570] sm:$0xff]  ;;  %v4369_v27 = vcombine.low %v1034_v12, %v1038_v10 }
 0x119   : > { %3877 = vmatprep.subr.bf16.mxu0 %v5073_v2  ;;  %v1111_v2 = vld [vmem:[%s6923_s2 + $0x330] sm:$0xff]  ;;  %v4345_v19 = vcombine.low %v1010_v29, %v1014_v62 }
 0x11a   : > { %v828_v45 = vpop.permute.xlu0 %827  ;;  %v4444_v34 = vcombine.high %v1107_v8, %v1111_v2  ;;  %v4443_v32 = vcombine.low %v1107_v8, %v1111_v2  ;;  %v1022_v8 = vld [vmem:[%s6923_s2 + $0x68] sm:$0xff]  ;;  %v1155_v2 = vld [vmem:[%s6923_s2 + $0x490] sm:$0xff] }
 0x11b   : > { %v868_v5 = vsel %vm855_vm6, %v828_v45, %v830_v31  ;;  %v4591_v31 = vcombine.low %v1257_v52, %v1261_v53  ;;  %v4484_v45 = vcombine.high %v1147_v41, %v1151_v55  ;;  %v1195_v3 = vld [vmem:[%s6923_s2 + $0x5d0] sm:$0xff] }
 0x11c   : > { %3314 = vmatpush1.bf16.msra.mxu1 %v868_v5  ;;  %v969_v47 = vpop.permute.xlu1 %968  ;;  %v1018_v5 = vld [vmem:[%s6923_s2 + $0x48] sm:$0xff] }
 0x11d   : > { %v4353_v58 = vcombine.low %v1018_v5, %v1022_v8 }
 0x11e   : > { %3227 = vmatmul.mubr.bf16.gmra.mrb[100].mxu1 %v4543_v36  ;;  %3685 = vmatmul.mubr.bf16.gmra.mrb[40].mxu0 %v4427_v42  ;;  %v967_v37 = vpop.permute.xlu0 %966  ;;  %v4475_v36 = vcombine.low %v1139_v54, %v1143_v60  ;;  %v4346_v42 = vcombine.high %v1010_v29, %v1014_v62  ;;  %v1191_v54 = vld [vmem:[%s6923_s2 + $0x5b0] sm:$0xff]  ;;  %v4515_v60 = vcombine.low %v1179_v22, %v1183_v26 }
 0x11f   : > { %3234 = vmatprep.mubr.bf16.mxu1 %v4552_v6  ;;  %3692 = vmatprep.mubr.bf16.mxu0 %v4436_v61  ;;  %v989_v11 = vsel %vm970_vm7, %v967_v37, %v969_v47  ;;  %v1275_v6 = vld [vmem:[%s6924_s3 + $0x50] sm:$0xff]  ;;  %v1276_v61 = vld [vmem:[%s6924_s3 + $0x58] sm:$0xff]  ;;  %v1050_v37 = vld [vmem:[%s6923_s2 + $0x148] sm:$0xff]  ;;  %v4524_v53 = vcombine.high %v1187_v51, %v1191_v54  ;;  %v4523_v62 = vcombine.low %v1187_v51, %v1191_v54 }
 0x120   : > { %3878 = vmatpush1.bf16.msra.mxu0 %v989_v11  ;;  %1381 = vperm.xlu1 %5048, %v1275_v6   ;;  %v1284_v47 = vld [vmem:[%s6924_s3 + $0x98] sm:$0xff]  ;;  %v4377_v11 = vcombine.low %v1042_v25, %v1046_v35  ;;  %v4386_v52 = vcombine.high %v1050_v37, %v1054_v50  ;;  %v4385_v29 = vcombine.low %v1050_v37, %v1054_v50  ;;  %v1203_v6 = vld [vmem:[%s6923_s2 + $0x610] sm:$0xff] }
 0x121   : > { %1386 = vperm.xlu0 %5047, %v1276_v61   ;;  %v1207_v61 = vld [vmem:[%s6923_s2 + $0x630] sm:$0xff] }
 0x125   : > { %1396 = vperm.xlu0 %5047, %v1278_v56   ;;  %v1215_v56 = vld [vmem:[%s6923_s2 + $0x670] sm:$0xff] }
 0x126   : > { %3235 = vmatmul.mubr.bf16.gmra.mrb[104].mxu1 %v4551_v15  ;;  %3693 = vmatmul.mubr.bf16.gmra.mrb[44].mxu0 %v4435_v20  ;;  %v4483_v15 = vcombine.low %v1147_v41, %v1151_v55  ;;  %v4354_v20 = vcombine.high %v1018_v5, %v1022_v8  ;;  %v4532_v55 = vcombine.high %v1195_v3, %v1199_v7 }
 0x127   : > { %3700 = vmatprep.mubr.bf16.mxu0 %v4444_v34  ;;  %3242 = vmatprep.mubr.bf16.mxu1 %v4560_v46  ;;  %v4492_v34 = vcombine.high %v1155_v2, %v1159_v18  ;;  %v1277_v46 = vld [vmem:[%s6924_s3 + $0x60] sm:$0xff]  ;;  %v4531_v8 = vcombine.low %v1195_v3, %v1199_v7  ;;  %v1298_v7 = vld [vmem:[%s6924_s3 + $0x108] sm:$0xff] }
 0x128   : > { %1391 = vperm.xlu1 %5048, %v1277_v46   ;;  %v1211_v46 = vld [vmem:[%s6923_s2 + $0x650] sm:$0xff] }
 0x129   : > { %1406 = vperm.xlu0 %5047, %v1280_v9   ;;  %v1223_v9 = vld [vmem:[%s6923_s2 + $0x6b0] sm:$0xff] }
 0x12d   : > { %1416 = vperm.xlu0 %5047, %v1282_v24   ;;  %v1231_v24 = vld [vmem:[%s6923_s2 + $0x6f0] sm:$0xff] }
 0x12e   : > { %3243 = vmatmul.mubr.bf16.gmra.mrb[108].mxu1 %v4559_v59  ;;  %3701 = vmatmul.mubr.bf16.gmra.mrb[48].mxu0 %v4443_v32  ;;  %v4491_v59 = vcombine.low %v1155_v2, %v1159_v18  ;;  %v4362_v32 = vcombine.high %v1026_v16, %v1030_v33  ;;  %v4540_v18 = vcombine.high %v1203_v6, %v1207_v61 }
 0x12f   : > { %3708 = vmatprep.mubr.bf16.mxu0 %v4452_v49  ;;  %3250 = vmatprep.mubr.bf16.mxu1 %v4568_v4  ;;  %v4500_v49 = vcombine.high %v1163_v30, %v1167_v57  ;;  %v1279_v4 = vld [vmem:[%s6924_s3 + $0x70] sm:$0xff]  ;;  %v4539_v33 = vcombine.low %v1203_v6, %v1207_v61  ;;  %v1300_v61 = vld [vmem:[%s6924_s3 + $0x118] sm:$0xff] }
 0x130   : > { %1401 = vperm.xlu1 %5048, %v1279_v4   ;;  %v1219_v4 = vld [vmem:[%s6923_s2 + $0x690] sm:$0xff] }
 0x131   : > { %1426 = vperm.xlu0 %5047, %v1284_v47   ;;  %v1239_v47 = vld [vmem:[%s6923_s2 + $0x730] sm:$0xff] }
 0x136   : > { %3251 = vmatmul.mubr.bf16.gmra.mrb[112].mxu1 %v4567_v17  ;;  %3709 = vmatmul.mubr.bf16.gmra.mrb[52].mxu0 %v4451_v28  ;;  %v4499_v17 = vcombine.low %v1163_v30, %v1167_v57  ;;  %v4370_v28 = vcombine.high %v1034_v12, %v1038_v10  ;;  %v4548_v57 = vcombine.high %v1211_v46, %v1215_v56 }
 0x137   : > { %3716 = vmatprep.mubr.bf16.mxu0 %v4460_v23  ;;  %3258 = vmatprep.mubr.bf16.mxu1 %v4576_v21  ;;  %v4508_v23 = vcombine.high %v1171_v13, %v1175_v40  ;;  %v1281_v21 = vld [vmem:[%s6924_s3 + $0x80] sm:$0xff]  ;;  %v4547_v10 = vcombine.low %v1211_v46, %v1215_v56  ;;  %v1302_v56 = vld [vmem:[%s6924_s3 + $0x128] sm:$0xff] }
 0x138   : > { %1411 = vperm.xlu1 %5048, %v1281_v21   ;;  %v1227_v21 = vld [vmem:[%s6923_s2 + $0x6d0] sm:$0xff] }
 0x139   : > { %v4563_v50 = vcombine.low %v1227_v21, %v1231_v24 }
 0x13e   : > { %3259 = vmatmul.mubr.bf16.gmra.mrb[116].mxu1 %v4575_v38  ;;  %3717 = vmatmul.mubr.bf16.gmra.mrb[56].mxu0 %v4459_v39  ;;  %v4507_v38 = vcombine.low %v1171_v13, %v1175_v40  ;;  %v4378_v39 = vcombine.high %v1042_v25, %v1046_v35  ;;  %v4556_v40 = vcombine.high %v1219_v4, %v1223_v9 }
 0x13f   : > { %3724 = vmatprep.mubr.bf16.mxu0 %v4468_v43  ;;  %3266 = vmatprep.mubr.bf16.mxu1 %v4584_v44  ;;  %v4516_v43 = vcombine.high %v1179_v22, %v1183_v26  ;;  %v1283_v44 = vld [vmem:[%s6924_s3 + $0x90] sm:$0xff]  ;;  %v4555_v35 = vcombine.low %v1219_v4, %v1223_v9  ;;  %v4564_v26 = vcombine.high %v1227_v21, %v1231_v24  ;;  %v1304_v9 = vld [vmem:[%s6924_s3 + $0x138] sm:$0xff]  ;;  %v1306_v24 = vld [vmem:[%s6924_s3 + $0x148] sm:$0xff] }
 0x140   : > { %1421 = vperm.xlu1 %5048, %v1283_v44   ;;  %v1235_v44 = vld [vmem:[%s6923_s2 + $0x710] sm:$0xff] }
 0x141   : > { %v4572_v54 = vcombine.high %v1235_v44, %v1239_v47 }
 0x146   : > { %3267 = vmatmul.mubr.bf16.gmra.mrb[120].mxu1 %v4583_v0  ;;  %3725 = vmatmul.mubr.bf16.gmra.mrb[60].mxu0 %v4467_v1  ;;  %v1285_v0 = vld [vmem:[%s6924_s3 + $0xa0] sm:$0xff]  ;;  %v1286_v1 = vld [vmem:[%s6924_s3 + $0xa8] sm:$0xff] }
 0x147   : > { %3732 = vmatprep.mubr.bf16.mxu0 %v4476_v48  ;;  %3274 = vmatprep.mubr.bf16.mxu1 %v4592_v63  ;;  %v1058_v48 = vld [vmem:[%s6923_s2 + $0x188] sm:$0xff] }
 0x148   : > { %v1062_v63 = vld [vmem:[%s6923_s2 + $0x1a8] sm:$0xff]  ;;  %1431 = vperm.xlu1 %5048, %v1285_v0   ;;  %1436 = vperm.xlu0 %5047, %v1286_v1   ;;  %v1297_v0 = vld [vmem:[%s6924_s3 + $0x100] sm:$0xff] }
 0x149   : > { %v4394_v41 = vcombine.high %v1058_v48, %v1062_v63  ;;  %v4393_v5 = vcombine.low %v1058_v48, %v1062_v63  ;;  %v4571_v48 = vcombine.low %v1235_v44, %v1239_v47  ;;  %v1308_v47 = vld [vmem:[%s6924_s3 + $0x158] sm:$0xff] }
 0x14e   : > { %3275 = vmatmul.mubr.bf16.gmra.mrb[124].mxu1 %v4591_v31  ;;  %3733 = vmatmul.mubr.bf16.gmra.mrb[64].mxu0 %v4475_v36  ;;  %v1287_v31 = vld [vmem:[%s6924_s3 + $0xb0] sm:$0xff]  ;;  %v1288_v36 = vld [vmem:[%s6924_s3 + $0xb8] sm:$0xff] }
 0x14f   : > { %3315 = vmatprep.mubr.bf16.mxu1 %v4346_v42  ;;  %3740 = vmatprep.mubr.bf16.mxu0 %v4484_v45  ;;  %v1066_v42 = vld [vmem:[%s6923_s2 + $0x1c8] sm:$0xff] }
 0x150   : > { %v1070_v45 = vld [vmem:[%s6923_s2 + $0x1e8] sm:$0xff]  ;;  %1441 = vperm.xlu1 %5048, %v1287_v31   ;;  %1446 = vperm.xlu0 %5047, %v1288_v36   ;;  %v1299_v31 = vld [vmem:[%s6924_s3 + $0x110] sm:$0xff] }
 0x151   : > { %v4402_v2 = vcombine.high %v1066_v42, %v1070_v45  ;;  %v4401_v16 = vcombine.low %v1066_v42, %v1070_v45 }
 0x156   : > { %3316 = vmatmul.mubr.bf16.vlgmr.msra.gmra.mrb[0].mxu1 %v4345_v19  ;;  %3741 = vmatmul.mubr.bf16.gmra.mrb[68].mxu0 %v4483_v15  ;;  %v1289_v19 = vld [vmem:[%s6924_s3 + $0xc0] sm:$0xff]  ;;  %v1290_v15 = vld [vmem:[%s6924_s3 + $0xc8] sm:$0xff] }
 0x157   : > { %3323 = vmatprep.mubr.bf16.mxu1 %v4354_v20  ;;  %3748 = vmatprep.mubr.bf16.mxu0 %v4492_v34  ;;  %v1074_v20 = vld [vmem:[%s6923_s2 + $0x208] sm:$0xff] }
 0x158   : > { %v1078_v34 = vld [vmem:[%s6923_s2 + $0x228] sm:$0xff]  ;;  %1451 = vperm.xlu1 %5048, %v1289_v19   ;;  %1456 = vperm.xlu0 %5047, %v1290_v15   ;;  %v1301_v19 = vld [vmem:[%s6924_s3 + $0x120] sm:$0xff] }
 0x159   : > { %v4410_v30 = vcombine.high %v1074_v20, %v1078_v34  ;;  %v4409_v12 = vcombine.low %v1074_v20, %v1078_v34 }
 0x15e   : > { %3324 = vmatmul.mubr.bf16.gmra.mrb[4].mxu1 %v4353_v58  ;;  %3749 = vmatmul.mubr.bf16.gmra.mrb[72].mxu0 %v4491_v59  ;;  %v1291_v58 = vld [vmem:[%s6924_s3 + $0xd0] sm:$0xff]  ;;  %v1292_v59 = vld [vmem:[%s6924_s3 + $0xd8] sm:$0xff] }
 0x15f   : > { %3331 = vmatprep.mubr.bf16.mxu1 %v4362_v32  ;;  %3756 = vmatprep.mubr.bf16.mxu0 %v4500_v49  ;;  %v1082_v32 = vld [vmem:[%s6923_s2 + $0x248] sm:$0xff] }
 0x160   : > { %v1086_v49 = vld [vmem:[%s6923_s2 + $0x268] sm:$0xff]  ;;  %1461 = vperm.xlu1 %5048, %v1291_v58   ;;  %1466 = vperm.xlu0 %5047, %v1292_v59   ;;  %v1303_v58 = vld [vmem:[%s6924_s3 + $0x130] sm:$0xff] }
 0x161   : > { %v4418_v13 = vcombine.high %v1082_v32, %v1086_v49  ;;  %v4417_v25 = vcombine.low %v1082_v32, %v1086_v49 }
 0x166   : > { %3332 = vmatmul.mubr.bf16.gmra.mrb[8].mxu1 %v4361_v14  ;;  %3757 = vmatmul.mubr.bf16.gmra.mrb[76].mxu0 %v4499_v17  ;;  %v1293_v14 = vld [vmem:[%s6924_s3 + $0xe0] sm:$0xff]  ;;  %v1294_v17 = vld [vmem:[%s6924_s3 + $0xe8] sm:$0xff] }
 0x167   : > { %3339 = vmatprep.mubr.bf16.mxu1 %v4370_v28  ;;  %3764 = vmatprep.mubr.bf16.mxu0 %v4508_v23  ;;  %v1090_v28 = vld [vmem:[%s6923_s2 + $0x288] sm:$0xff] }
 0x168   : > { %v1094_v23 = vld [vmem:[%s6923_s2 + $0x2a8] sm:$0xff]  ;;  %1471 = vperm.xlu1 %5048, %v1293_v14   ;;  %1476 = vperm.xlu0 %5047, %v1294_v17   ;;  %v1305_v14 = vld [vmem:[%s6924_s3 + $0x140] sm:$0xff] }
 0x169   : > { %v4426_v22 = vcombine.high %v1090_v28, %v1094_v23  ;;  %v4425_v37 = vcombine.low %v1090_v28, %v1094_v23 }
 0x16e   : > { %3340 = vmatmul.mubr.bf16.gmra.mrb[12].mxu1 %v4369_v27  ;;  %3765 = vmatmul.mubr.bf16.gmra.mrb[80].mxu0 %v4507_v38  ;;  %v1295_v27 = vld [vmem:[%s6924_s3 + $0xf0] sm:$0xff]  ;;  %v1296_v38 = vld [vmem:[%s6924_s3 + $0xf8] sm:$0xff] }
 0x16f   : > { %3347 = vmatprep.mubr.bf16.mxu1 %v4378_v39  ;;  %3772 = vmatprep.mubr.bf16.mxu0 %v4516_v43  ;;  %v1098_v39 = vld [vmem:[%s6923_s2 + $0x2c8] sm:$0xff] }
 0x170   : > { %v1102_v43 = vld [vmem:[%s6923_s2 + $0x2e8] sm:$0xff]  ;;  %1481 = vperm.xlu1 %5048, %v1295_v27   ;;  %1486 = vperm.xlu0 %5047, %v1296_v38   ;;  %v1307_v27 = vld [vmem:[%s6924_s3 + $0x150] sm:$0xff] }
 0x171   : > { %v4434_v51 = vcombine.high %v1098_v39, %v1102_v43  ;;  %v4433_v1 = vcombine.low %v1098_v39, %v1102_v43 }
 0x174   : > { %1491 = vperm.xlu1 %5048, %v1297_v0   ;;  %1496 = vperm.xlu0 %5047, %v1298_v7   ;;  %v1048_v7 = vld [vmem:[%s6923_s2 + $0x138] sm:$0xff] }
 0x176   : > { %3348 = vmatmul.mubr.bf16.gmra.mrb[16].mxu1 %v4377_v11  ;;  %3773 = vmatmul.mubr.bf16.gmra.mrb[84].mxu0 %v4515_v60  ;;  %v1106_v11 = vld [vmem:[%s6923_s2 + $0x308] sm:$0xff] }
 0x177   : > { %3355 = vmatprep.mubr.bf16.mxu1 %v4386_v52  ;;  %3780 = vmatprep.mubr.bf16.mxu0 %v4524_v53  ;;  %v1110_v60 = vld [vmem:[%s6923_s2 + $0x328] sm:$0xff]  ;;  %v1243_v52 = vld [vmem:[%s6923_s2 + $0x750] sm:$0xff] }
 0x178   : > { %v1247_v53 = vld [vmem:[%s6923_s2 + $0x770] sm:$0xff]  ;;  %v4442_v63 = vcombine.high %v1106_v11, %v1110_v60  ;;  %v4441_v36 = vcombine.low %v1106_v11, %v1110_v60  ;;  %1501 = vperm.xlu1 %5048, %v1299_v31   ;;  %1506 = vperm.xlu0 %5047, %v1300_v61   ;;  %v1309_v11 = vld [vmem:[%s6924_s3 + $0x160] sm:$0xff]  ;;  %v1056_v61 = vld [vmem:[%s6923_s2 + $0x178] sm:$0xff] }
 0x179   : > { %v4580_v3 = vcombine.high %v1243_v52, %v1247_v53  ;;  %v4579_v42 = vcombine.low %v1243_v52, %v1247_v53 }
 0x17c   : > { %1511 = vperm.xlu1 %5048, %v1301_v19   ;;  %1516 = vperm.xlu0 %5047, %v1302_v56   ;;  %v1064_v56 = vld [vmem:[%s6923_s2 + $0x1b8] sm:$0xff] }
 0x17e   : > { %3356 = vmatmul.mubr.bf16.gmra.mrb[20].mxu1 %v4385_v29  ;;  %3781 = vmatmul.mubr.bf16.gmra.mrb[88].mxu0 %v4523_v62  ;;  %v1114_v29 = vld [vmem:[%s6923_s2 + $0x348] sm:$0xff] }
 0x17f   : > { %3363 = vmatprep.mubr.bf16.mxu1 %v4394_v41  ;;  %3788 = vmatprep.mubr.bf16.mxu0 %v4532_v55  ;;  %v1118_v62 = vld [vmem:[%s6923_s2 + $0x368] sm:$0xff]  ;;  %v1251_v41 = vld [vmem:[%s6923_s2 + $0x790] sm:$0xff] }
 0x180   : > { %v1255_v55 = vld [vmem:[%s6923_s2 + $0x7b0] sm:$0xff]  ;;  %v4450_v45 = vcombine.high %v1114_v29, %v1118_v62  ;;  %v4449_v15 = vcombine.low %v1114_v29, %v1118_v62  ;;  %1521 = vperm.xlu1 %5048, %v1303_v58   ;;  %1526 = vperm.xlu0 %5047, %v1304_v9   ;;  %v1072_v9 = vld [vmem:[%s6923_s2 + $0x1f8] sm:$0xff] }
 0x181   : > { %v4588_v6 = vcombine.high %v1251_v41, %v1255_v55  ;;  %v4587_v20 = vcombine.low %v1251_v41, %v1255_v55  ;;  %v1311_v29 = vld [vmem:[%s6924_s3 + $0x170] sm:$0xff] }
 0x184   : > { %1531 = vperm.xlu1 %5048, %v1305_v14   ;;  %1536 = vperm.xlu0 %5047, %v1306_v24   ;;  %v1080_v24 = vld [vmem:[%s6923_s2 + $0x238] sm:$0xff] }
 0x186   : > { %3364 = vmatmul.mubr.bf16.gmra.mrb[24].mxu1 %v4393_v5  ;;  %3789 = vmatmul.mubr.bf16.gmra.mrb[92].mxu0 %v4531_v8  ;;  %v1122_v5 = vld [vmem:[%s6923_s2 + $0x388] sm:$0xff] }
 0x187   : > { %3371 = vmatprep.mubr.bf16.mxu1 %v4402_v2  ;;  %3796 = vmatprep.mubr.bf16.mxu0 %v4540_v18  ;;  %v1126_v8 = vld [vmem:[%s6923_s2 + $0x3a8] sm:$0xff]  ;;  %v1259_v2 = vld [vmem:[%s6923_s2 + $0x7d0] sm:$0xff] }
 0x188   : > { %v1263_v18 = vld [vmem:[%s6923_s2 + $0x7f0] sm:$0xff]  ;;  %v4458_v34 = vcombine.high %v1122_v5, %v1126_v8  ;;  %v4457_v59 = vcombine.low %v1122_v5, %v1126_v8  ;;  %1541 = vperm.xlu1 %5048, %v1307_v27   ;;  %1546 = vperm.xlu0 %5047, %v1308_v47   ;;  %v1313_v5 = vld [vmem:[%s6924_s3 + $0x180] sm:$0xff]  ;;  %v1088_v47 = vld [vmem:[%s6923_s2 + $0x278] sm:$0xff] }
 0x189   : > { %v4596_v46 = vcombine.high %v1259_v2, %v1263_v18  ;;  %v4595_v32 = vcombine.low %v1259_v2, %v1263_v18 }
 0x18c   : > { %1551 = vperm.xlu1 %5048, %v1309_v11  }
 0x18e   : > { %3372 = vmatmul.mubr.bf16.gmra.mrb[28].mxu1 %v4401_v16  ;;  %3797 = vmatmul.mubr.bf16.gmra.mrb[96].mxu0 %v4539_v33  ;;  %v1130_v16 = vld [vmem:[%s6923_s2 + $0x3c8] sm:$0xff] }
 0x18f   : > { %3379 = vmatprep.mubr.bf16.mxu1 %v4410_v30  ;;  %3804 = vmatprep.mubr.bf16.mxu0 %v4548_v57  ;;  %v1134_v33 = vld [vmem:[%s6923_s2 + $0x3e8] sm:$0xff]  ;;  %v1012_v30 = vld [vmem:[%s6923_s2 + $0x18] sm:$0xff] }
 0x190   : > { %v1016_v57 = vld [vmem:[%s6923_s2 + $0x38] sm:$0xff]  ;;  %v4466_v49 = vcombine.high %v1130_v16, %v1134_v33  ;;  %v4465_v28 = vcombine.low %v1130_v16, %v1134_v33  ;;  %1561 = vperm.xlu1 %5048, %v1311_v29   ;;  %v1315_v16 = vld [vmem:[%s6924_s3 + $0x190] sm:$0xff] }
 0x191   : > { %v4350_v4 = vcombine.high %v1012_v30, %v1016_v57  ;;  %v4349_v17 = vcombine.low %v1012_v30, %v1016_v57 }
 0x194   : > { %1571 = vperm.xlu1 %5048, %v1313_v5  }
 0x196   : > { %3380 = vmatmul.mubr.bf16.gmra.mrb[32].mxu1 %v4409_v12  ;;  %3805 = vmatmul.mubr.bf16.gmra.mrb[100].mxu0 %v4547_v10  ;;  %v1138_v12 = vld [vmem:[%s6923_s2 + $0x408] sm:$0xff] }
 0x197   : > { %3387 = vmatprep.mubr.bf16.mxu1 %v4418_v13  ;;  %3812 = vmatprep.mubr.bf16.mxu0 %v4556_v40  ;;  %v1142_v10 = vld [vmem:[%s6923_s2 + $0x428] sm:$0xff]  ;;  %v1020_v13 = vld [vmem:[%s6923_s2 + $0x58] sm:$0xff] }
 0x198   : > { %v1024_v40 = vld [vmem:[%s6923_s2 + $0x78] sm:$0xff]  ;;  %v4474_v23 = vcombine.high %v1138_v12, %v1142_v10  ;;  %v4473_v38 = vcombine.low %v1138_v12, %v1142_v10  ;;  %1581 = vperm.xlu1 %5048, %v1315_v16   ;;  %v1317_v12 = vld [vmem:[%s6924_s3 + $0x1a0] sm:$0xff] }
 0x199   : > { %v4358_v21 = vcombine.high %v1020_v13, %v1024_v40  ;;  %v4357_v39 = vcombine.low %v1020_v13, %v1024_v40 }
 0x19c   : > { %1591 = vperm.xlu1 %5048, %v1317_v12  }
 0x19e   : > { %3388 = vmatmul.mubr.bf16.gmra.mrb[36].mxu1 %v4417_v25  ;;  %3813 = vmatmul.mubr.bf16.gmra.mrb[104].mxu0 %v4555_v35  ;;  %v1146_v25 = vld [vmem:[%s6923_s2 + $0x448] sm:$0xff] }
 0x19f   : > { %3395 = vmatprep.mubr.bf16.mxu1 %v4426_v22  ;;  %3820 = vmatprep.mubr.bf16.mxu0 %v4564_v26  ;;  %v1150_v35 = vld [vmem:[%s6923_s2 + $0x468] sm:$0xff]  ;;  %v1028_v22 = vld [vmem:[%s6923_s2 + $0x98] sm:$0xff] }
 0x1a0   : > { %v1032_v26 = vld [vmem:[%s6923_s2 + $0xb8] sm:$0xff]  ;;  %v4482_v43 = vcombine.high %v1146_v25, %v1150_v35  ;;  %v4481_v60 = vcombine.low %v1146_v25, %v1150_v35  ;;  %v1319_v25 = vld [vmem:[%s6924_s3 + $0x1b0] sm:$0xff] }
 0x1a1   : > { %v4366_v44 = vcombine.high %v1028_v22, %v1032_v26  ;;  %v4365_v52 = vcombine.low %v1028_v22, %v1032_v26  ;;  %1601 = vperm.xlu1 %5048, %v1319_v25  }
 0x1a6   : > { %3396 = vmatmul.mubr.bf16.gmra.mrb[40].mxu1 %v4425_v37  ;;  %3821 = vmatmul.mubr.bf16.gmra.mrb[108].mxu0 %v4563_v50  ;;  %v1154_v37 = vld [vmem:[%s6923_s2 + $0x488] sm:$0xff] }
 0x1a7   : > { %3403 = vmatprep.mubr.bf16.mxu1 %v4434_v51  ;;  %3828 = vmatprep.mubr.bf16.mxu0 %v4572_v54  ;;  %v1158_v50 = vld [vmem:[%s6923_s2 + $0x4a8] sm:$0xff]  ;;  %v1036_v51 = vld [vmem:[%s6923_s2 + $0xd8] sm:$0xff] }
 0x1a8   : > { %v1040_v54 = vld [vmem:[%s6923_s2 + $0xf8] sm:$0xff]  ;;  %v4490_v53 = vcombine.high %v1154_v37, %v1158_v50  ;;  %v4489_v62 = vcombine.low %v1154_v37, %v1158_v50  ;;  %v1321_v37 = vld [vmem:[%s6924_s3 + $0x1c0] sm:$0xff] }
 0x1a9   : > { %v4374_v0 = vcombine.high %v1036_v51, %v1040_v54  ;;  %v4373_v41 = vcombine.low %v1036_v51, %v1040_v54  ;;  %1611 = vperm.xlu1 %5048, %v1321_v37  }
 0x1ae   : > { %3404 = vmatmul.mubr.bf16.gmra.mrb[44].mxu1 %v4433_v1  ;;  %3829 = vmatmul.mubr.bf16.gmra.mrb[112].mxu0 %v4571_v48  ;;  %v1310_v1 = vld [vmem:[%s6924_s3 + $0x168] sm:$0xff] }
 0x1af   : > { %3411 = vmatprep.mubr.bf16.mxu1 %v4442_v63  ;;  %3836 = vmatprep.mubr.bf16.mxu0 %v4580_v3  ;;  %v1162_v48 = vld [vmem:[%s6923_s2 + $0x4c8] sm:$0xff]  ;;  %v1044_v3 = vld [vmem:[%s6923_s2 + $0x118] sm:$0xff] }
 0x1b0   : > { %1556 = vperm.xlu0 %5047, %v1310_v1   ;;  %v1166_v63 = vld [vmem:[%s6923_s2 + $0x4e8] sm:$0xff]  ;;  %v4382_v31 = vcombine.high %v1044_v3, %v1048_v7  ;;  %v4381_v2 = vcombine.low %v1044_v3, %v1048_v7  ;;  %v1096_v1 = vld [vmem:[%s6923_s2 + $0x2b8] sm:$0xff] }
 0x1b1   : > { %v4498_v55 = vcombine.high %v1162_v48, %v1166_v63  ;;  %v4497_v8 = vcombine.low %v1162_v48, %v1166_v63  ;;  %v1323_v48 = vld [vmem:[%s6924_s3 + $0x1d0] sm:$0xff] }
 0x1b2   : > { %1621 = vperm.xlu1 %5048, %v1323_v48   ;;  %v1140_v48 = vld [vmem:[%s6923_s2 + $0x418] sm:$0xff] }
 0x1b6   : > { %3412 = vmatmul.mubr.bf16.gmra.mrb[48].mxu1 %v4441_v36  ;;  %3837 = vmatmul.mubr.bf16.gmra.mrb[116].mxu0 %v4579_v42  ;;  %v1312_v36 = vld [vmem:[%s6924_s3 + $0x178] sm:$0xff]  ;;  %v1170_v42 = vld [vmem:[%s6923_s2 + $0x508] sm:$0xff] }
 0x1b7   : > { %3419 = vmatprep.mubr.bf16.mxu1 %v4450_v45  ;;  %3844 = vmatprep.mubr.bf16.mxu0 %v4588_v6  ;;  %v1174_v45 = vld [vmem:[%s6923_s2 + $0x528] sm:$0xff]  ;;  %v1052_v6 = vld [vmem:[%s6923_s2 + $0x158] sm:$0xff] }
 0x1b8   : > { %1566 = vperm.xlu0 %5047, %v1312_v36   ;;  %v4506_v18 = vcombine.high %v1170_v42, %v1174_v45  ;;  %v4390_v19 = vcombine.high %v1052_v6, %v1056_v61  ;;  %v4505_v33 = vcombine.low %v1170_v42, %v1174_v45  ;;  %v4389_v30 = vcombine.low %v1052_v6, %v1056_v61  ;;  %v1104_v36 = vld [vmem:[%s6923_s2 + $0x2f8] sm:$0xff]  ;;  %v1325_v42 = vld [vmem:[%s6924_s3 + $0x1e0] sm:$0xff]  ;;  %v1326_v45 = vld [vmem:[%s6924_s3 + $0x1e8] sm:$0xff] }
 0x1b9   : > { %1631 = vperm.xlu1 %5048, %v1325_v42   ;;  %v1148_v42 = vld [vmem:[%s6923_s2 + $0x458] sm:$0xff] }
 0x1be   : > { %3420 = vmatmul.mubr.bf16.gmra.mrb[52].mxu1 %v4449_v15  ;;  %3845 = vmatmul.mubr.bf16.gmra.mrb[120].mxu0 %v4587_v20  ;;  %v1314_v15 = vld [vmem:[%s6924_s3 + $0x188] sm:$0xff] }
 0x1bf   : > { %3427 = vmatprep.mubr.bf16.mxu1 %v4458_v34  ;;  %3852 = vmatprep.mubr.bf16.mxu0 %v4596_v46  ;;  %v1178_v20 = vld [vmem:[%s6923_s2 + $0x548] sm:$0xff]  ;;  %v1060_v46 = vld [vmem:[%s6923_s2 + $0x198] sm:$0xff] }
 0x1c0   : > { %1576 = vperm.xlu0 %5047, %v1314_v15   ;;  %v1182_v34 = vld [vmem:[%s6923_s2 + $0x568] sm:$0xff]  ;;  %v4398_v58 = vcombine.high %v1060_v46, %v1064_v56  ;;  %v4397_v13 = vcombine.low %v1060_v46, %v1064_v56 }
 0x1c1   : > { %v4514_v57 = vcombine.high %v1178_v20, %v1182_v34  ;;  %v4513_v10 = vcombine.low %v1178_v20, %v1182_v34  ;;  %v1230_v15 = vld [vmem:[%s6923_s2 + $0x6e8] sm:$0xff]  ;;  %v1108_v20 = vld [vmem:[%s6923_s2 + $0x318] sm:$0xff] }
 0x1c2   : > { %v1112_v34 = vld [vmem:[%s6923_s2 + $0x338] sm:$0xff] }
 0x1c6   : > { %3428 = vmatmul.mubr.bf16.gmra.mrb[56].mxu1 %v4457_v59  ;;  %3853 = vmatmul.mubr.bf16.gmra.mrb[124].mxu0 %v4595_v32  ;;  %v1316_v59 = vld [vmem:[%s6924_s3 + $0x198] sm:$0xff]  ;;  %v1186_v32 = vld [vmem:[%s6923_s2 + $0x588] sm:$0xff] }
 0x1c7   : > { %3435 = vmatprep.mubr.bf16.mxu1 %v4466_v49  ;;  %4599 = vmatprep.mubr.msk.bf16.mxu0 %vm2897_vm8, %v4350_v4  ;;  %v1190_v49 = vld [vmem:[%s6923_s2 + $0x5a8] sm:$0xff]  ;;  %v1068_v4 = vld [vmem:[%s6923_s2 + $0x1d8] sm:$0xff] }
 0x1c8   : > { %1586 = vperm.xlu0 %5047, %v1316_v59   ;;  %v4522_v40 = vcombine.high %v1186_v32, %v1190_v49  ;;  %v4406_v14 = vcombine.high %v1068_v4, %v1072_v9  ;;  %v4521_v35 = vcombine.low %v1186_v32, %v1190_v49  ;;  %v4405_v22 = vcombine.low %v1068_v4, %v1072_v9  ;;  %v1120_v59 = vld [vmem:[%s6923_s2 + $0x378] sm:$0xff] }
 0x1c9   : > { %v4445_v9 = vcombine.low %v1108_v20, %v1112_v34 }
 0x1ce   : > { %3436 = vmatmul.mubr.bf16.gmra.mrb[60].mxu1 %v4465_v28  ;;  %3894 = vmatmul.mubr.bf16.vlgmr.msra.gmra.mrb[0].mxu0 %v4349_v17  ;;  %v1318_v17 = vld [vmem:[%s6924_s3 + $0x1a8] sm:$0xff] }
 0x1cf   : > { %3443 = vmatprep.mubr.bf16.mxu1 %v4474_v23  ;;  %4600 = vmatprep.mubr.msk.bf16.mxu0 %vm2897_vm8, %v4358_v21  ;;  %v1194_v28 = vld [vmem:[%s6923_s2 + $0x5c8] sm:$0xff]  ;;  %v1076_v21 = vld [vmem:[%s6923_s2 + $0x218] sm:$0xff] }
 0x1d0   : > { %1596 = vperm.xlu0 %5047, %v1318_v17   ;;  %v1198_v23 = vld [vmem:[%s6923_s2 + $0x5e8] sm:$0xff]  ;;  %v4414_v27 = vcombine.high %v1076_v21, %v1080_v24  ;;  %v4413_v51 = vcombine.low %v1076_v21, %v1080_v24 }
 0x1d1   : > { %v4530_v26 = vcombine.high %v1194_v28, %v1198_v23  ;;  %v4529_v50 = vcombine.low %v1194_v28, %v1198_v23  ;;  %v1246_v17 = vld [vmem:[%s6923_s2 + $0x768] sm:$0xff]  ;;  %v1124_v28 = vld [vmem:[%s6923_s2 + $0x398] sm:$0xff] }
 0x1d2   : > { %v1128_v23 = vld [vmem:[%s6923_s2 + $0x3b8] sm:$0xff] }
 0x1d6   : > { %3444 = vmatmul.mubr.bf16.gmra.mrb[64].mxu1 %v4473_v38  ;;  %3902 = vmatmul.mubr.bf16.gmra.mrb[4].mxu0 %v4357_v39  ;;  %v1320_v38 = vld [vmem:[%s6924_s3 + $0x1b8] sm:$0xff]  ;;  %v1202_v39 = vld [vmem:[%s6923_s2 + $0x608] sm:$0xff] }
 0x1d7   : > { %3451 = vmatprep.mubr.bf16.mxu1 %v4482_v43  ;;  %4601 = vmatprep.mubr.msk.bf16.mxu0 %vm2897_vm8, %v4366_v44  ;;  %v1206_v43 = vld [vmem:[%s6923_s2 + $0x628] sm:$0xff]  ;;  %v1084_v44 = vld [vmem:[%s6923_s2 + $0x258] sm:$0xff] }
 0x1d8   : > { %1606 = vperm.xlu0 %5047, %v1320_v38   ;;  %v4538_v54 = vcombine.high %v1202_v39, %v1206_v43  ;;  %v4422_v11 = vcombine.high %v1084_v44, %v1088_v47  ;;  %v4537_v63 = vcombine.low %v1202_v39, %v1206_v43  ;;  %v4421_v3 = vcombine.low %v1084_v44, %v1088_v47  ;;  %v1250_v39 = vld [vmem:[%s6923_s2 + $0x788] sm:$0xff]  ;;  %v1132_v44 = vld [vmem:[%s6923_s2 + $0x3d8] sm:$0xff] }
 0x1d9   : > { %v1254_v43 = vld [vmem:[%s6923_s2 + $0x7a8] sm:$0xff]  ;;  %v1136_v47 = vld [vmem:[%s6923_s2 + $0x3f8] sm:$0xff] }
 0x1de   : > { %3452 = vmatmul.mubr.bf16.gmra.mrb[68].mxu1 %v4481_v60  ;;  %3910 = vmatmul.mubr.bf16.gmra.mrb[8].mxu0 %v4365_v52  ;;  %v1322_v60 = vld [vmem:[%s6924_s3 + $0x1c8] sm:$0xff] }
 0x1df   : > { %3459 = vmatprep.mubr.bf16.mxu1 %v4490_v53  ;;  %4602 = vmatprep.mubr.msk.bf16.mxu0 %vm2897_vm8, %v4374_v0  ;;  %v1210_v52 = vld [vmem:[%s6923_s2 + $0x648] sm:$0xff]  ;;  %v1092_v0 = vld [vmem:[%s6923_s2 + $0x298] sm:$0xff] }
 0x1e0   : > { %1616 = vperm.xlu0 %5047, %v1322_v60   ;;  %v1214_v53 = vld [vmem:[%s6923_s2 + $0x668] sm:$0xff]  ;;  %v4430_v29 = vcombine.high %v1092_v0, %v1096_v1  ;;  %v4429_v61 = vcombine.low %v1092_v0, %v1096_v1  ;;  %v4586_v60 = vcombine.high %v1250_v39, %v1254_v43 }
 0x1e1   : > { %v4546_v7 = vcombine.high %v1210_v52, %v1214_v53  ;;  %v4545_v6 = vcombine.low %v1210_v52, %v1214_v53  ;;  %v4470_v52 = vcombine.high %v1132_v44, %v1136_v47  ;;  %v1258_v0 = vld [vmem:[%s6923_s2 + $0x7c8] sm:$0xff] }
 0x1e2   : > { %v1262_v1 = vld [vmem:[%s6923_s2 + $0x7e8] sm:$0xff] }
 0x1e6   : > { %3460 = vmatmul.mubr.bf16.gmra.mrb[72].mxu1 %v4489_v62  ;;  %3918 = vmatmul.mubr.bf16.gmra.mrb[12].mxu0 %v4373_v41  ;;  %v1324_v62 = vld [vmem:[%s6924_s3 + $0x1d8] sm:$0xff]  ;;  %v1218_v41 = vld [vmem:[%s6923_s2 + $0x688] sm:$0xff] }
 0x1e7   : > { %3467 = vmatprep.mubr.bf16.mxu1 %v4498_v55  ;;  %4603 = vmatprep.mubr.msk.bf16.mxu0 %vm2897_vm8, %v4382_v31  ;;  %v1222_v55 = vld [vmem:[%s6923_s2 + $0x6a8] sm:$0xff]  ;;  %v1100_v31 = vld [vmem:[%s6923_s2 + $0x2d8] sm:$0xff] }
 0x1e8   : > { %1626 = vperm.xlu0 %5047, %v1324_v62   ;;  %v4554_v5 = vcombine.high %v1218_v41, %v1222_v55  ;;  %v4553_v46 = vcombine.low %v1218_v41, %v1222_v55  ;;  %v4437_v56 = vcombine.low %v1100_v31, %v1104_v36  ;;  %v4469_v62 = vcombine.low %v1132_v44, %v1136_v47 }
 0x1e9   : > { %v4594_v55 = vcombine.high %v1258_v0, %v1262_v1 }
 0x1ec   : > { %1636 = vperm.xlu0 %5047, %v1326_v45   ;;  %v1152_v45 = vld [vmem:[%s6923_s2 + $0x478] sm:$0xff] }
 0x1ee   : > { %3468 = vmatmul.mubr.bf16.gmra.mrb[76].mxu1 %v4497_v8  ;;  %3926 = vmatmul.mubr.bf16.gmra.mrb[16].mxu0 %v4381_v2  ;;  %v4438_v8 = vcombine.high %v1100_v31, %v1104_v36  ;;  %v1327_v2 = vld [vmem:[%s6924_s3 + $0x1f0] sm:$0xff] }
 0x1ef   : > { %3475 = vmatprep.mubr.bf16.mxu1 %v4506_v18  ;;  %4604 = vmatprep.mubr.msk.bf16.mxu0 %vm2897_vm8, %v4390_v19  ;;  %v1328_v18 = vld [vmem:[%s6924_s3 + $0x1f8] sm:$0xff]  ;;  %v1226_v19 = vld [vmem:[%s6923_s2 + $0x6c8] sm:$0xff] }
 0x1f0   : > { %1641 = vperm.xlu1 %5048, %v1327_v2   ;;  %1646 = vperm.xlu0 %5047, %v1328_v18   ;;  %v4562_v16 = vcombine.high %v1226_v19, %v1230_v15  ;;  %v4561_v4 = vcombine.low %v1226_v19, %v1230_v15  ;;  %v4486_v18 = vcombine.high %v1148_v42, %v1152_v45  ;;  %v1156_v15 = vld [vmem:[%s6923_s2 + $0x498] sm:$0xff] }
 0x1f6   : > { %3476 = vmatmul.mubr.bf16.gmra.mrb[80].mxu1 %v4505_v33  ;;  %3934 = vmatmul.mubr.bf16.gmra.mrb[20].mxu0 %v4389_v30  ;;  %v4446_v33 = vcombine.high %v1108_v20, %v1112_v34  ;;  %v1234_v30 = vld [vmem:[%s6923_s2 + $0x708] sm:$0xff]  ;;  %v1160_v20 = vld [vmem:[%s6923_s2 + $0x4b8] sm:$0xff] }
 0x1f7   : > { %3483 = vmatprep.mubr.bf16.mxu1 %v4514_v57  ;;  %4605 = vmatprep.mubr.msk.bf16.mxu0 %vm2897_vm8, %v4398_v58  ;;  %v1238_v57 = vld [vmem:[%s6923_s2 + $0x728] sm:$0xff]  ;;  %v1116_v58 = vld [vmem:[%s6923_s2 + $0x358] sm:$0xff] }
 0x1f8   : > { %v4569_v25 = vcombine.low %v1234_v30, %v1238_v57 }
 0x1fe   : > { %3484 = vmatmul.mubr.bf16.gmra.mrb[84].mxu1 %v4513_v10  ;;  %3942 = vmatmul.mubr.bf16.gmra.mrb[24].mxu0 %v4397_v13  ;;  %v4570_v10 = vcombine.high %v1234_v30, %v1238_v57  ;;  %v4454_v13 = vcombine.high %v1116_v58, %v1120_v59  ;;  %v1164_v57 = vld [vmem:[%s6923_s2 + $0x4d8] sm:$0xff] }
 0x1ff   : > { %3491 = vmatprep.mubr.bf16.mxu1 %v4522_v40  ;;  %4606 = vmatprep.mubr.msk.bf16.mxu0 %vm2897_vm8, %v4406_v14  ;;  %v1242_v14 = vld [vmem:[%s6923_s2 + $0x748] sm:$0xff] }
 0x206   : > { %3492 = vmatmul.mubr.bf16.gmra.mrb[88].mxu1 %v4521_v35  ;;  %3950 = vmatmul.mubr.bf16.gmra.mrb[28].mxu0 %v4405_v22  ;;  %v4453_v35 = vcombine.low %v1116_v58, %v1120_v59  ;;  %v1168_v58 = vld [vmem:[%s6923_s2 + $0x4f8] sm:$0xff] }
 0x207   : > { %3499 = vmatprep.mubr.bf16.mxu1 %v4530_v26  ;;  %4607 = vmatprep.mubr.msk.bf16.mxu0 %vm2897_vm8, %v4414_v27  ;;  %v4578_v26 = vcombine.high %v1242_v14, %v1246_v17  ;;  %v4462_v27 = vcombine.high %v1124_v28, %v1128_v23 }
 0x20e   : > { %3500 = vmatmul.mubr.bf16.gmra.mrb[92].mxu1 %v4529_v50  ;;  %3958 = vmatmul.mubr.bf16.gmra.mrb[32].mxu0 %v4413_v51  ;;  %v4577_v51 = vcombine.low %v1242_v14, %v1246_v17  ;;  %v1176_v14 = vld [vmem:[%s6923_s2 + $0x538] sm:$0xff] }
 0x20f   : > { %3507 = vmatprep.mubr.bf16.mxu1 %v4538_v54  ;;  %4608 = vmatprep.mubr.msk.bf16.mxu0 %vm2897_vm8, %v4422_v11  ;;  %v4461_v54 = vcombine.low %v1124_v28, %v1128_v23  ;;  %v4501_v23 = vcombine.low %v1164_v57, %v1168_v58 }
 0x216   : > { %3508 = vmatmul.mubr.bf16.gmra.mrb[96].mxu1 %v4537_v63  ;;  %3966 = vmatmul.mubr.bf16.gmra.mrb[36].mxu0 %v4421_v3  ;;  %v1144_v63 = vld [vmem:[%s6923_s2 + $0x438] sm:$0xff] }
 0x217   : > { %3515 = vmatprep.mubr.bf16.mxu1 %v4546_v7  ;;  %4609 = vmatprep.mubr.msk.bf16.mxu0 %vm2897_vm8, %v4430_v29  ;;  %v4585_v29 = vcombine.low %v1250_v39, %v1254_v43  ;;  %v4478_v31 = vcombine.high %v1140_v48, %v1144_v63 }
 0x21e   : > { %3516 = vmatmul.mubr.bf16.gmra.mrb[100].mxu1 %v4545_v6  ;;  %3974 = vmatmul.mubr.bf16.gmra.mrb[40].mxu0 %v4429_v61 }
 0x21f   : > { %3523 = vmatprep.mubr.bf16.mxu1 %v4554_v5  ;;  %4610 = vmatprep.mubr.msk.bf16.mxu0 %vm2897_vm8, %v4438_v8  ;;  %v4593_v5 = vcombine.low %v1258_v0, %v1262_v1  ;;  %v4477_v8 = vcombine.low %v1140_v48, %v1144_v63  ;;  %v1196_v63 = vld [vmem:[%s6923_s2 + $0x5d8] sm:$0xff] }
 0x226   : > { %3524 = vmatmul.mubr.bf16.gmra.mrb[104].mxu1 %v4553_v46  ;;  %3982 = vmatmul.mubr.bf16.gmra.mrb[44].mxu0 %v4437_v56  ;;  %v4485_v56 = vcombine.low %v1148_v42, %v1152_v45  ;;  %v1204_v45 = vld [vmem:[%s6923_s2 + $0x618] sm:$0xff] }
 0x227   : > { %3531 = vmatprep.mubr.bf16.mxu1 %v4562_v16  ;;  %4611 = vmatprep.mubr.msk.bf16.mxu0 %vm2897_vm8, %v4446_v33  ;;  %v4494_v33 = vcombine.high %v1156_v15, %v1160_v20 }
 0x229   : > { %v6505_v32 = vpop.f32.mrb[0].mxu1 }
 0x22a   : > { %v3319_v49 = vpop.f32.mrb[1].mxu1 }
 0x22b   : > { %v6507_v12 = vpop.f32.mrb[2].mxu1 }
 0x22c   : > { %v3322_v40 = vpop.f32.mrb[3].mxu1 }
 0x22d   : > { %v1172_v40 = vld [vmem:[%s6923_s2 + $0x518] sm:$0xff] }
 0x22e   : > { %3532 = vmatmul.mubr.bf16.gmra.mrb[108].mxu1 %v4561_v4  ;;  %3990 = vmatmul.mubr.bf16.gmra.mrb[48].mxu0 %v4445_v9  ;;  %v4493_v4 = vcombine.low %v1156_v15, %v1160_v20  ;;  %v4509_v43 = vcombine.low %v1172_v40, %v1176_v14 }
 0x22f   : > { %3539 = vmatprep.mubr.bf16.mxu1 %v4570_v10  ;;  %4612 = vmatprep.mubr.msk.bf16.mxu0 %vm2897_vm8, %v4454_v13  ;;  %v4502_v10 = vcombine.high %v1164_v57, %v1168_v58 }
 0x231   : > { %v6522_v21 = vpop.f32.mrb[4].mxu1 }
 0x232   : > { %v3327_v24 = vpop.f32.mrb[5].mxu1 }
 0x233   : > { %v6524_v22 = vpop.f32.mrb[6].mxu1 }
 0x234   : > { %v3330_v38 = vpop.f32.mrb[7].mxu1 }
 0x236   : > { %3540 = vmatmul.mubr.bf16.gmra.mrb[112].mxu1 %v4569_v25  ;;  %3998 = vmatmul.mubr.bf16.gmra.mrb[52].mxu0 %v4453_v35  ;;  %v4510_v25 = vcombine.high %v1172_v40, %v1176_v14 }
 0x237   : > { %3547 = vmatprep.mubr.bf16.mxu1 %v4578_v26  ;;  %4613 = vmatprep.mubr.msk.bf16.mxu0 %vm2897_vm8, %v4462_v27  ;;  %v1180_v26 = vld [vmem:[%s6923_s2 + $0x558] sm:$0xff] }
 0x238   : > { %v1184_v27 = vld [vmem:[%s6923_s2 + $0x578] sm:$0xff] }
 0x239   : > { %v6539_v37 = vpop.f32.mrb[8].mxu1  ;;  %v4518_v47 = vcombine.high %v1180_v26, %v1184_v27 }
 0x23a   : > { %v3335_v50 = vpop.f32.mrb[9].mxu1 }
 0x23b   : > { %v6541_v11 = vpop.f32.mrb[10].mxu1 }
 0x23c   : > { %v3338_v53 = vpop.f32.mrb[11].mxu1 }
 0x23d   : > { %v4517_v53 = vcombine.low %v1180_v26, %v1184_v27  ;;  %v1228_v26 = vld [vmem:[%s6923_s2 + $0x6d8] sm:$0xff] }
 0x23e   : > { %3548 = vmatmul.mubr.bf16.gmra.mrb[116].mxu1 %v4577_v51  ;;  %4006 = vmatmul.mubr.bf16.gmra.mrb[56].mxu0 %v4461_v54  ;;  %v1188_v51 = vld [vmem:[%s6923_s2 + $0x598] sm:$0xff] }
 0x23f   : > { %3555 = vmatprep.mubr.bf16.mxu1 %v4586_v60  ;;  %4614 = vmatprep.mubr.msk.bf16.mxu0 %vm2897_vm8, %v4470_v52  ;;  %v1192_v54 = vld [vmem:[%s6923_s2 + $0x5b8] sm:$0xff] }
 0x240   : > { %v4526_v1 = vcombine.high %v1188_v51, %v1192_v54  ;;  %v1232_v27 = vld [vmem:[%s6923_s2 + $0x6f8] sm:$0xff] }
 0x241   : > { %v6556_v3 = vpop.f32.mrb[12].mxu1 }
 0x242   : > { %v3343_v7 = vpop.f32.mrb[13].mxu1 }
 0x243   : > { %v6558_v41 = vpop.f32.mrb[14].mxu1  ;;  %v1200_v7 = vld [vmem:[%s6923_s2 + $0x5f8] sm:$0xff] }
 0x244   : > { %v3346_v36 = vpop.f32.mrb[15].mxu1 }
 0x245   : > { %v4534_v36 = vcombine.high %v1196_v63, %v1200_v7 }
 0x246   : > { %3556 = vmatmul.mubr.bf16.gmra.mrb[120].mxu1 %v4585_v29  ;;  %4014 = vmatmul.mubr.bf16.gmra.mrb[60].mxu0 %v4469_v62 }
 0x247   : > { %3563 = vmatprep.mubr.bf16.mxu1 %v4594_v55  ;;  %4615 = vmatprep.mubr.msk.bf16.mxu0 %vm2897_vm8, %v4478_v31  ;;  %v4525_v55 = vcombine.low %v1188_v51, %v1192_v54  ;;  %v4566_v51 = vcombine.high %v1228_v26, %v1232_v27 }
 0x249   : > { %v6567_v6 = vpop.f32.mrb[16].mxu1 }
 0x24a   : > { %v3351_v61 = vpop.f32.mrb[17].mxu1 }
 0x24b   : > { %v6569_v2 = vpop.f32.mrb[18].mxu1  ;;  %v1208_v61 = vld [vmem:[%s6923_s2 + $0x638] sm:$0xff] }
 0x24c   : > { %v3354_v19 = vpop.f32.mrb[19].mxu1  ;;  %v4542_v15 = vcombine.high %v1204_v45, %v1208_v61  ;;  %v4541_v57 = vcombine.low %v1204_v45, %v1208_v61  ;;  %v4565_v45 = vcombine.low %v1228_v26, %v1232_v27 }
 0x24e   : > { %3564 = vmatmul.mubr.bf16.gmra.mrb[124].mxu1 %v4593_v5  ;;  %4022 = vmatmul.mubr.bf16.gmra.mrb[64].mxu0 %v4477_v8 }
 0x24f   : > { %4616 = vmatprep.mubr.msk.bf16.mxu0 %vm2897_vm8, %v4486_v18  ;;  %v4533_v18 = vcombine.low %v1196_v63, %v1200_v7  ;;  %v1240_v63 = vld [vmem:[%s6923_s2 + $0x738] sm:$0xff] }
 0x251   : > { %v6578_v34 = vpop.f32.mrb[20].mxu1 }
 0x252   : > { %v3359_v46 = vpop.f32.mrb[21].mxu1 }
 0x253   : > { %v6580_v16 = vpop.f32.mrb[22].mxu1  ;;  %v1212_v46 = vld [vmem:[%s6923_s2 + $0x658] sm:$0xff] }
 0x254   : > { %v3362_v30 = vpop.f32.mrb[23].mxu1 }
 0x256   : > { %4030 = vmatmul.mubr.bf16.gmra.mrb[68].mxu0 %v4485_v56  ;;  %v1216_v56 = vld [vmem:[%s6923_s2 + $0x678] sm:$0xff] }
 0x257   : > { %4617 = vmatprep.mubr.msk.bf16.mxu0 %vm2897_vm8, %v4494_v33 }
 0x259   : > { %v6589_v59 = vpop.f32.mrb[24].mxu1 }
 0x25a   : > { %v3367_v49 = vpop.f32.mrb[25].mxu1 }
 0x25b   : > { %v6591_v9 = vpop.f32.mrb[26].mxu1  ;;  %v4550_v49 = vcombine.high %v1212_v46, %v1216_v56 }
 0x25c   : > { %v3370_v13 = vpop.f32.mrb[27].mxu1 }
 0x25d   : > { %v1224_v13 = vld [vmem:[%s6923_s2 + $0x6b8] sm:$0xff] }
 0x25e   : > { %4038 = vmatmul.mubr.bf16.gmra.mrb[72].mxu0 %v4493_v4 }
 0x25f   : > { %4618 = vmatprep.mubr.msk.bf16.mxu0 %vm2897_vm8, %v4502_v10  ;;  %v1220_v10 = vld [vmem:[%s6923_s2 + $0x698] sm:$0xff] }
 0x261   : > { %v6600_v17 = vpop.f32.mrb[28].mxu1 }
 0x262   : > { %v3375_v28 = vpop.f32.mrb[29].mxu1 }
 0x263   : > { %v6602_v24 = vpop.f32.mrb[30].mxu1  ;;  %v4549_v28 = vcombine.low %v1212_v46, %v1216_v56 }
 0x264   : > { %v3378_v35 = vpop.f32.mrb[31].mxu1 }
 0x266   : > { %4046 = vmatmul.mubr.bf16.gmra.mrb[76].mxu0 %v4501_v23 }
 0x267   : > { %4619 = vmatprep.mubr.msk.bf16.mxu0 %vm2897_vm8, %v4510_v25  ;;  %v4558_v25 = vcombine.high %v1220_v10, %v1224_v13 }
 0x269   : > { %v6611_v38 = vpop.f32.mrb[32].mxu1 }
 0x26a   : > { %v3383_v39 = vpop.f32.mrb[33].mxu1 }
 0x26b   : > { %v6613_v44 = vpop.f32.mrb[34].mxu1 }
 0x26c   : > { %v3386_v50 = vpop.f32.mrb[35].mxu1 }
 0x26e   : > { %4054 = vmatmul.mubr.bf16.gmra.mrb[80].mxu0 %v4509_v43 }
 0x26f   : > { %4620 = vmatprep.mubr.msk.bf16.mxu0 %vm2897_vm8, %v4518_v47  ;;  %v4557_v47 = vcombine.low %v1220_v10, %v1224_v13 }
 0x271   : > { %v6622_v60 = vpop.f32.mrb[36].mxu1 }
 0x272   : > { %v3391_v52 = vpop.f32.mrb[37].mxu1 }
 0x273   : > { %v6624_v0 = vpop.f32.mrb[38].mxu1  ;;  %v1332_v52 = vpop.permute.xlu0 %1331 }
 0x274   : > { %v3394_v48 = vpop.f32.mrb[39].mxu1 }
 0x275   : > { %v1236_v48 = vld [vmem:[%s6923_s2 + $0x718] sm:$0xff] }
 0x276   : > { %4062 = vmatmul.mubr.bf16.gmra.mrb[84].mxu0 %v4517_v53  ;;  %v1337_v53 = vpop.permute.xlu1 %1336 }
 0x277   : > { %4621 = vmatprep.mubr.msk.bf16.mxu0 %vm2897_vm8, %v4526_v1  ;;  %v4634_v1 = vadd.f32 %v6505_v32, %v1332_v52  ;;  %v4636_v32 = vadd.f32 %v6507_v12, %v1337_v53  ;;  %v1252_v53 = vld [vmem:[%s6923_s2 + $0x798] sm:$0xff] }
 0x279   : > { %v6633_v29 = vpop.f32.mrb[40].mxu1 }
 0x27a   : > { %v3399_v62 = vpop.f32.mrb[41].mxu1  ;;  %v1342_v56 = vpop.permute.xlu1 %1341 }
 0x27b   : > { %v6635_v31 = vpop.f32.mrb[42].mxu1  ;;  %v4638_v12 = vadd.f32 %v6522_v21, %v1342_v56 }
 0x27c   : > { %v3402_v42 = vpop.f32.mrb[43].mxu1 }
 0x27e   : > { %4070 = vmatmul.mubr.bf16.gmra.mrb[88].mxu0 %v4525_v55 }
 0x27f   : > { %4622 = vmatprep.mubr.msk.bf16.mxu0 %vm2897_vm8, %v4534_v36 }
 0x281   : > { %v6644_v5 = vpop.f32.mrb[44].mxu1 }
 0x282   : > { %v3407_v8 = vpop.f32.mrb[45].mxu1 }
 0x283   : > { %v6646_v19 = vpop.f32.mrb[46].mxu1 }
 0x284   : > { %v3410_v20 = vpop.f32.mrb[47].mxu1 }
 0x286   : > { %4078 = vmatmul.mubr.bf16.gmra.mrb[92].mxu0 %v4533_v18  ;;  %v4574_v18 = vcombine.high %v1236_v48, %v1240_v63 }
 0x287   : > { %4623 = vmatprep.mubr.msk.bf16.mxu0 %vm2897_vm8, %v4542_v15 }
 0x289   : > { %v6655_v33 = vpop.f32.mrb[48].mxu1 }
 0x28a   : > { %v3415_v30 = vpop.f32.mrb[49].mxu1 }
 0x28b   : > { %v6657_v58 = vpop.f32.mrb[50].mxu1  ;;  %v1347_v30 = vpop.permute.xlu0 %1346 }
 0x28c   : > { %v3418_v4 = vpop.f32.mrb[51].mxu1  ;;  %v4640_v13 = vadd.f32 %v6524_v22, %v1347_v30  ;;  %v1260_v30 = vld [vmem:[%s6923_s2 + $0x7d8] sm:$0xff] }
 0x28e   : > { %4086 = vmatmul.mubr.bf16.gmra.mrb[96].mxu0 %v4541_v57  ;;  %v1244_v57 = vld [vmem:[%s6923_s2 + $0x758] sm:$0xff] }
 0x28f   : > { %4624 = vmatprep.mubr.msk.bf16.mxu0 %vm2897_vm8, %v4550_v49  ;;  %v1248_v49 = vld [vmem:[%s6923_s2 + $0x778] sm:$0xff]  ;;  %v1357_v52 = vpop.permute.xlu0 %1356 }
 0x290   : > { %v4582_v27 = vcombine.high %v1244_v57, %v1248_v49 }
 0x291   : > { %v6666_v40 = vpop.f32.mrb[52].mxu1 }
 0x292   : > { %v3423_v14 = vpop.f32.mrb[53].mxu1 }
 0x293   : > { %v6668_v23 = vpop.f32.mrb[54].mxu1  ;;  %v1367_v56 = vpop.permute.xlu0 %1366 }
 0x294   : > { %v3426_v35 = vpop.f32.mrb[55].mxu1 }
 0x295   : > { %v4573_v35 = vcombine.low %v1236_v48, %v1240_v63 }
 0x296   : > { %4094 = vmatmul.mubr.bf16.gmra.mrb[100].mxu0 %v4549_v28 }
 0x297   : > { %4625 = vmatprep.mubr.msk.bf16.mxu0 %vm2897_vm8, %v4558_v25 }
 0x299   : > { %v6677_v39 = vpop.f32.mrb[56].mxu1 }
 0x29a   : > { %v3431_v43 = vpop.f32.mrb[57].mxu1 }
 0x29b   : > { %v6679_v50 = vpop.f32.mrb[58].mxu1 }
 0x29c   : > { %v3434_v54 = vpop.f32.mrb[59].mxu1 }
 0x29d   : > { %v1352_v54 = vpop.permute.xlu1 %1351 }
 0x29e   : > { %4102 = vmatmul.mubr.bf16.gmra.mrb[104].mxu0 %v4557_v47  ;;  %v4642_v22 = vadd.f32 %v6539_v37, %v1352_v54  ;;  %v1377_v54 = vpop.permute.xlu0 %1376 }
 0x29f   : > { %4626 = vmatprep.mubr.msk.bf16.mxu0 %vm2897_vm8, %v4566_v51 }
 0x2a1   : > { %v6690_v7 = vpop.f32.mrb[60].mxu1  ;;  %v3895_v62 = vpop.f32.mrb[0].mxu0 }
 0x2a2   : > { %v4635_v55 = vadd.f32 %v4634_v1, %v3895_v62  ;;  %v3439_v36 = vpop.f32.mrb[61].mxu1  ;;  %v3897_v42 = vpop.f32.mrb[1].mxu0  ;;  %v1256_v1 = vld [vmem:[%s6923_s2 + $0x7b8] sm:$0xff]  ;;  %v4644_v62 = vadd.f32 %v6541_v11, %v1357_v52 }
 0x2a3   : > { %v3898_v61 = vpop.f32.mrb[2].mxu0  ;;  %v6698_v8 = vpop.f32.mrb[62].mxu1  ;;  %v4581_v42 = vcombine.low %v1244_v57, %v1248_v49 }
 0x2a4   : > { %4150 = vst [vmem:[%s6695_s24] sm:$0xff] %v4635_v55  ;;  %v4637_v15 = vadd.f32 %v4636_v32, %v3898_v61  ;;  %v3442_v20 = vpop.f32.mrb[63].mxu1  ;;  %v3900_v46 = vpop.f32.mrb[3].mxu0  ;;  %v4590_v61 = vcombine.high %v1252_v53, %v1256_v1 }
 0x2a5   : > { %v1362_v46 = vpop.permute.xlu1 %1361 }
 0x2a6   : > { %4151 = vst [vmem:[%s6695_s24 + $0x8] sm:$0xff] %v4637_v15  ;;  %4110 = vmatmul.mubr.bf16.gmra.mrb[108].mxu0 %v4565_v45  ;;  %v4646_v11 = vadd.f32 %v6556_v3, %v1362_v46 }
 0x2a7   : > { %4627 = vmatprep.mubr.msk.bf16.mxu0 %vm2897_vm8, %v4574_v18 }
 0x2a9   : > { %v6710_v4 = vpop.f32.mrb[64].mxu1  ;;  %v3903_v10 = vpop.f32.mrb[4].mxu0 }
 0x2aa   : > { %v4639_v14 = vadd.f32 %v4638_v12, %v3903_v10  ;;  %v3447_v28 = vpop.f32.mrb[65].mxu1  ;;  %v3905_v25 = vpop.f32.mrb[5].mxu0  ;;  %v1264_v12 = vld [vmem:[%s6923_s2 + $0x7f8] sm:$0xff]  ;;  %v4648_v10 = vadd.f32 %v6558_v41, %v1367_v56 }
 0x2ab   : > { %v3906_v26 = vpop.f32.mrb[6].mxu0  ;;  %v6713_v21 = vpop.f32.mrb[66].mxu1  ;;  %v4589_v25 = vcombine.low %v1252_v53, %v1256_v1  ;;  %v4652_v53 = vadd.f32 %v6569_v2, %v1377_v54 }
 0x2ac   : > { %4152 = vst [vmem:[%s6695_s24 + $0x10] sm:$0xff] %v4639_v14  ;;  %v4641_v43 = vadd.f32 %v4640_v13, %v3906_v26  ;;  %v3450_v47 = vpop.f32.mrb[67].mxu1  ;;  %v3908_v51 = vpop.f32.mrb[7].mxu0  ;;  %v4598_v26 = vcombine.high %v1260_v30, %v1264_v12 }
 0x2ad   : > { %v1372_v51 = vpop.permute.xlu1 %1371 }
 0x2ae   : > { %4153 = vst [vmem:[%s6695_s24 + $0x18] sm:$0xff] %v4641_v43  ;;  %4118 = vmatmul.mubr.bf16.gmra.mrb[112].mxu0 %v4573_v35  ;;  %v4650_v41 = vadd.f32 %v6567_v6, %v1372_v51  ;;  %v1387_v6 = vpop.permute.xlu0 %1386 }
 0x2af   : > { %4628 = vmatprep.mubr.msk.bf16.mxu0 %vm2897_vm8, %v4582_v27  ;;  %v4656_v46 = vadd.f32 %v6580_v16, %v1387_v6 }
 0x2b1   : > { %v6725_v48 = vpop.f32.mrb[68].mxu1  ;;  %v3911_v63 = vpop.f32.mrb[8].mxu0 }
 0x2b2   : > { %v4643_v32 = vadd.f32 %v4642_v22, %v3911_v63  ;;  %v3455_v55 = vpop.f32.mrb[69].mxu1  ;;  %v3913_v36 = vpop.f32.mrb[9].mxu0 }
 0x2b3   : > { %v3914_v45 = vpop.f32.mrb[10].mxu0  ;;  %v6728_v37 = vpop.f32.mrb[70].mxu1 }
 0x2b4   : > { %4154 = vst [vmem:[%s6695_s24 + $0x20] sm:$0xff] %v4643_v32  ;;  %v4645_v18 = vadd.f32 %v4644_v62, %v3914_v45  ;;  %v3458_v15 = vpop.f32.mrb[71].mxu1  ;;  %v3916_v20 = vpop.f32.mrb[11].mxu0  ;;  %v4597_v32 = vcombine.low %v1260_v30, %v1264_v12 }
 0x2b6   : > { %4155 = vst [vmem:[%s6695_s24 + $0x28] sm:$0xff] %v4645_v18  ;;  %4126 = vmatmul.mubr.bf16.gmra.mrb[116].mxu0 %v4581_v42  ;;  %v1382_v18 = vpop.permute.xlu1 %1381 }
 0x2b7   : > { %4629 = vmatprep.mubr.msk.bf16.mxu0 %vm2897_vm8, %v4590_v61  ;;  %v4654_v15 = vadd.f32 %v6578_v34, %v1382_v18  ;;  %v1397_v34 = vpop.permute.xlu0 %1396 }
 0x2b9   : > { %v6740_v57 = vpop.f32.mrb[72].mxu1  ;;  %v3919_v49 = vpop.f32.mrb[12].mxu0 }
 0x2ba   : > { %v4647_v13 = vadd.f32 %v4646_v11, %v3919_v49  ;;  %v3463_v14 = vpop.f32.mrb[73].mxu1  ;;  %v3921_v28 = vpop.f32.mrb[13].mxu0 }
 0x2bb   : > { %v3922_v35 = vpop.f32.mrb[14].mxu0  ;;  %v6743_v3 = vpop.f32.mrb[74].mxu1 }
 0x2bc   : > { %4156 = vst [vmem:[%s6695_s24 + $0x30] sm:$0xff] %v4647_v13  ;;  %v4649_v27 = vadd.f32 %v4648_v10, %v3922_v35  ;;  %v3466_v43 = vpop.f32.mrb[75].mxu1  ;;  %v3924_v47 = vpop.f32.mrb[15].mxu0 }
 0x2bd   : > { %v1392_v28 = vpop.permute.xlu1 %1391 }
 0x2be   : > { %4157 = vst [vmem:[%s6695_s24 + $0x38] sm:$0xff] %v4649_v27  ;;  %4134 = vmatmul.mubr.bf16.gmra.mrb[120].mxu0 %v4589_v25  ;;  %v4658_v25 = vadd.f32 %v6589_v59, %v1392_v28  ;;  %v1407_v59 = vpop.permute.xlu0 %1406 }
 0x2bf   : > { %4630 = vmatprep.mubr.msk.bf16.mxu0 %vm2897_vm8, %v4598_v26  ;;  %v4660_v26 = vadd.f32 %v6591_v9, %v1397_v34 }
 0x2c1   : > { %v6749_v52 = vpop.f32.mrb[76].mxu1  ;;  %v3927_v22 = vpop.f32.mrb[16].mxu0 }
 0x2c2   : > { %v4651_v1 = vadd.f32 %v4650_v41, %v3927_v22  ;;  %v3471_v63 = vpop.f32.mrb[77].mxu1  ;;  %v3929_v62 = vpop.f32.mrb[17].mxu0 }
 0x2c3   : > { %v3930_v55 = vpop.f32.mrb[18].mxu0  ;;  %v6752_v36 = vpop.f32.mrb[78].mxu1 }
 0x2c4   : > { %4158 = vst [vmem:[%s6695_s24 + $0x40] sm:$0xff] %v4651_v1  ;;  %v4653_v42 = vadd.f32 %v4652_v53, %v3930_v55  ;;  %v3474_v45 = vpop.f32.mrb[79].mxu1  ;;  %v3932_v61 = vpop.f32.mrb[19].mxu0 }
 0x2c5   : > { %v1402_v1 = vpop.permute.xlu1 %1401 }
 0x2c6   : > { %4159 = vst [vmem:[%s6695_s24 + $0x48] sm:$0xff] %v4653_v42  ;;  %4142 = vmatmul.mubr.bf16.gmra.mrb[124].mxu0 %v4597_v32  ;;  %v4662_v63 = vadd.f32 %v6600_v17, %v1402_v1  ;;  %v4664_v32 = vadd.f32 %v6602_v24, %v1407_v59  ;;  %v1417_v17 = vpop.permute.xlu0 %1416 }
 0x2c9   : > { %v6757_v2 = vpop.f32.mrb[80].mxu1  ;;  %v3935_v20 = vpop.f32.mrb[20].mxu0 }
 0x2ca   : > { %v4655_v56 = vadd.f32 %v4654_v15, %v3935_v20  ;;  %v3479_v11 = vpop.f32.mrb[81].mxu1  ;;  %v3937_v30 = vpop.f32.mrb[21].mxu0 }
 0x2cb   : > { %v3938_v12 = vpop.f32.mrb[22].mxu0  ;;  %v6760_v49 = vpop.f32.mrb[82].mxu1  ;;  %v4668_v30 = vadd.f32 %v6613_v44, %v1417_v17 }
 0x2cc   : > { %4160 = vst [vmem:[%s6695_s24 + $0x50] sm:$0xff] %v4655_v56  ;;  %v4657_v10 = vadd.f32 %v4656_v46, %v3938_v12  ;;  %v3482_v13 = vpop.f32.mrb[83].mxu1  ;;  %v3940_v14 = vpop.f32.mrb[23].mxu0 }
 0x2cd   : > { %v1412_v46 = vpop.permute.xlu1 %1411 }
 0x2ce   : > { %4161 = vst [vmem:[%s6695_s24 + $0x58] sm:$0xff] %v4657_v10  ;;  %v4666_v56 = vadd.f32 %v6611_v38, %v1412_v46  ;;  %v1427_v38 = vpop.permute.xlu0 %1426 }
 0x2d1   : > { %v6765_v35 = vpop.f32.mrb[84].mxu1  ;;  %v3943_v16 = vpop.f32.mrb[24].mxu0 }
 0x2d2   : > { %v4659_v27 = vadd.f32 %v4658_v25, %v3943_v16  ;;  %v3487_v43 = vpop.f32.mrb[85].mxu1  ;;  %v3945_v47 = vpop.f32.mrb[25].mxu0 }
 0x2d3   : > { %v3946_v51 = vpop.f32.mrb[26].mxu0  ;;  %v6768_v54 = vpop.f32.mrb[86].mxu1  ;;  %v4672_v47 = vadd.f32 %v6624_v0, %v1427_v38 }
 0x2d4   : > { %4162 = vst [vmem:[%s6695_s24 + $0x60] sm:$0xff] %v4659_v27  ;;  %v4661_v41 = vadd.f32 %v4660_v26, %v3946_v51  ;;  %v3490_v22 = vpop.f32.mrb[87].mxu1  ;;  %v3948_v53 = vpop.f32.mrb[27].mxu0 }
 0x2d5   : > { %v1422_v26 = vpop.permute.xlu1 %1421 }
 0x2d6   : > { %4163 = vst [vmem:[%s6695_s24 + $0x68] sm:$0xff] %v4661_v41  ;;  %v4670_v27 = vadd.f32 %v6622_v60, %v1422_v26  ;;  %v1437_v60 = vpop.permute.xlu0 %1436 }
 0x2d9   : > { %v6773_v62 = vpop.f32.mrb[88].mxu1  ;;  %v3951_v9 = vpop.f32.mrb[28].mxu0 }
 0x2da   : > { %v4663_v55 = vadd.f32 %v4662_v63, %v3951_v9  ;;  %v3495_v42 = vpop.f32.mrb[89].mxu1  ;;  %v3953_v45 = vpop.f32.mrb[29].mxu0 }
 0x2db   : > { %v3954_v61 = vpop.f32.mrb[30].mxu0  ;;  %v6776_v18 = vpop.f32.mrb[90].mxu1  ;;  %v4676_v45 = vadd.f32 %v6635_v31, %v1437_v60 }
 0x2dc   : > { %4164 = vst [vmem:[%s6695_s24 + $0x70] sm:$0xff] %v4663_v55  ;;  %v4665_v6 = vadd.f32 %v4664_v32, %v3954_v61  ;;  %v3498_v15 = vpop.f32.mrb[91].mxu1  ;;  %v3956_v20 = vpop.f32.mrb[31].mxu0 }
 0x2dd   : > { %v1432_v32 = vpop.permute.xlu1 %1431 }
 0x2de   : > { %4165 = vst [vmem:[%s6695_s24 + $0x78] sm:$0xff] %v4665_v6  ;;  %v4674_v55 = vadd.f32 %v6633_v29, %v1432_v32  ;;  %v1447_v29 = vpop.permute.xlu0 %1446 }
 0x2e1   : > { %v6781_v11 = vpop.f32.mrb[92].mxu1  ;;  %v3959_v24 = vpop.f32.mrb[32].mxu0 }
 0x2e2   : > { %v4667_v12 = vadd.f32 %v4666_v56, %v3959_v24  ;;  %v3503_v10 = vpop.f32.mrb[93].mxu1  ;;  %v3961_v13 = vpop.f32.mrb[33].mxu0 }
 0x2e3   : > { %v3962_v14 = vpop.f32.mrb[34].mxu0  ;;  %v6784_v28 = vpop.f32.mrb[94].mxu1  ;;  %v4680_v13 = vadd.f32 %v6646_v19, %v1447_v29 }
 0x2e4   : > { %4166 = vst [vmem:[%s6695_s24 + $0x80] sm:$0xff] %v4667_v12  ;;  %v4669_v34 = vadd.f32 %v4668_v30, %v3962_v14  ;;  %v3506_v25 = vpop.f32.mrb[95].mxu1  ;;  %v3964_v16 = vpop.f32.mrb[35].mxu0 }
 0x2e5   : > { %v1442_v30 = vpop.permute.xlu1 %1441 }
 0x2e6   : > { %4167 = vst [vmem:[%s6695_s24 + $0x88] sm:$0xff] %v4669_v34  ;;  %v4678_v12 = vadd.f32 %v6644_v5, %v1442_v30  ;;  %v1457_v5 = vpop.permute.xlu0 %1456 }
 0x2e9   : > { %v6789_v43 = vpop.f32.mrb[96].mxu1  ;;  %v3967_v44 = vpop.f32.mrb[36].mxu0 }
 0x2ea   : > { %v4671_v51 = vadd.f32 %v4670_v27, %v3967_v44  ;;  %v3511_v41 = vpop.f32.mrb[97].mxu1  ;;  %v3969_v22 = vpop.f32.mrb[37].mxu0 }
 0x2eb   : > { %v3970_v53 = vpop.f32.mrb[38].mxu0  ;;  %v6792_v1 = vpop.f32.mrb[98].mxu1  ;;  %v4684_v22 = vadd.f32 %v6657_v58, %v1457_v5 }
 0x2ec   : > { %4168 = vst [vmem:[%s6695_s24 + $0x90] sm:$0xff] %v4671_v51  ;;  %v4673_v59 = vadd.f32 %v4672_v47, %v3970_v53  ;;  %v3514_v63 = vpop.f32.mrb[99].mxu1  ;;  %v3972_v9 = vpop.f32.mrb[39].mxu0 }
 0x2ed   : > { %v1452_v47 = vpop.permute.xlu1 %1451 }
 0x2ee   : > { %4169 = vst [vmem:[%s6695_s24 + $0x98] sm:$0xff] %v4673_v59  ;;  %v4682_v51 = vadd.f32 %v6655_v33, %v1452_v47  ;;  %v1467_v33 = vpop.permute.xlu0 %1466 }
 0x2f1   : > { %v6797_v42 = vpop.f32.mrb[100].mxu1  ;;  %v3975_v0 = vpop.f32.mrb[40].mxu0 }
 0x2f2   : > { %v4675_v61 = vadd.f32 %v4674_v55, %v3975_v0  ;;  %v3519_v6 = vpop.f32.mrb[101].mxu1  ;;  %v3977_v15 = vpop.f32.mrb[41].mxu0 }
 0x2f3   : > { %v3978_v20 = vpop.f32.mrb[42].mxu0  ;;  %v6800_v46 = vpop.f32.mrb[102].mxu1  ;;  %v4688_v15 = vadd.f32 %v6668_v23, %v1467_v33 }
 0x2f4   : > { %4170 = vst [vmem:[%s6695_s24 + $0xa0] sm:$0xff] %v4675_v61  ;;  %v4677_v17 = vadd.f32 %v4676_v45, %v3978_v20  ;;  %v3522_v56 = vpop.f32.mrb[103].mxu1  ;;  %v3980_v24 = vpop.f32.mrb[43].mxu0 }
 0x2f5   : > { %v1462_v45 = vpop.permute.xlu1 %1461 }
 0x2f6   : > { %4171 = vst [vmem:[%s6695_s24 + $0xa8] sm:$0xff] %v4677_v17  ;;  %v4686_v61 = vadd.f32 %v6666_v40, %v1462_v45  ;;  %v1477_v40 = vpop.permute.xlu0 %1476 }
 0x2f9   : > { %v6805_v10 = vpop.f32.mrb[104].mxu1  ;;  %v3983_v31 = vpop.f32.mrb[44].mxu0 }
 0x2fa   : > { %v4679_v14 = vadd.f32 %v4678_v12, %v3983_v31  ;;  %v3527_v34 = vpop.f32.mrb[105].mxu1  ;;  %v3985_v25 = vpop.f32.mrb[45].mxu0 }
 0x2fb   : > { %v3986_v16 = vpop.f32.mrb[46].mxu0  ;;  %v6808_v26 = vpop.f32.mrb[106].mxu1  ;;  %v4692_v25 = vadd.f32 %v6679_v50, %v1477_v40 }
 0x2fc   : > { %4172 = vst [vmem:[%s6695_s24 + $0xb0] sm:$0xff] %v4679_v14  ;;  %v4681_v38 = vadd.f32 %v4680_v13, %v3986_v16  ;;  %v3530_v27 = vpop.f32.mrb[107].mxu1  ;;  %v3988_v44 = vpop.f32.mrb[47].mxu0 }
 0x2fd   : > { %v1472_v13 = vpop.permute.xlu1 %1471 }
 0x2fe   : > { %4173 = vst [vmem:[%s6695_s24 + $0xb8] sm:$0xff] %v4681_v38  ;;  %v4690_v14 = vadd.f32 %v6677_v39, %v1472_v13  ;;  %v1487_v39 = vpop.permute.xlu0 %1486 }
 0x301   : > { %v6813_v41 = vpop.f32.mrb[108].mxu1  ;;  %v3991_v19 = vpop.f32.mrb[48].mxu0 }
 0x302   : > { %v4683_v53 = vadd.f32 %v4682_v51, %v3991_v19  ;;  %v3535_v59 = vpop.f32.mrb[109].mxu1  ;;  %v3993_v63 = vpop.f32.mrb[49].mxu0 }
 0x303   : > { %v3994_v9 = vpop.f32.mrb[50].mxu0  ;;  %v6816_v32 = vpop.f32.mrb[110].mxu1  ;;  %v4696_v63 = vadd.f32 %v6698_v8, %v1487_v39 }
 0x304   : > { %4174 = vst [vmem:[%s6695_s24 + $0xc0] sm:$0xff] %v4683_v53  ;;  %v4685_v60 = vadd.f32 %v4684_v22, %v3994_v9  ;;  %v3538_v55 = vpop.f32.mrb[111].mxu1  ;;  %v3996_v0 = vpop.f32.mrb[51].mxu0 }
 0x305   : > { %v1482_v22 = vpop.permute.xlu1 %1481 }
 0x306   : > { %4175 = vst [vmem:[%s6695_s24 + $0xc8] sm:$0xff] %v4685_v60  ;;  %v4694_v53 = vadd.f32 %v6690_v7, %v1482_v22  ;;  %v1497_v7 = vpop.permute.xlu0 %1496 }
 0x309   : > { %v6821_v6 = vpop.f32.mrb[112].mxu1  ;;  %v3999_v58 = vpop.f32.mrb[52].mxu0 }
 0x30a   : > { %v4687_v20 = vadd.f32 %v4686_v61, %v3999_v58  ;;  %v3543_v17 = vpop.f32.mrb[113].mxu1  ;;  %v4001_v56 = vpop.f32.mrb[53].mxu0 }
 0x30b   : > { %v4002_v24 = vpop.f32.mrb[54].mxu0  ;;  %v6824_v30 = vpop.f32.mrb[114].mxu1  ;;  %v4700_v56 = vadd.f32 %v6713_v21, %v1497_v7 }
 0x30c   : > { %4176 = vst [vmem:[%s6695_s24 + $0xd0] sm:$0xff] %v4687_v20  ;;  %v4689_v29 = vadd.f32 %v4688_v15, %v4002_v24  ;;  %v3546_v12 = vpop.f32.mrb[115].mxu1  ;;  %v4004_v31 = vpop.f32.mrb[55].mxu0 }
 0x30d   : > { %v1492_v15 = vpop.permute.xlu1 %1491 }
 0x30e   : > { %4177 = vst [vmem:[%s6695_s24 + $0xd8] sm:$0xff] %v4689_v29  ;;  %v4698_v20 = vadd.f32 %v6710_v4, %v1492_v15  ;;  %v1507_v4 = vpop.permute.xlu0 %1506 }
 0x30f   : > { %v4704_v21 = vadd.f32 %v6728_v37, %v1507_v4 }
 0x311   : > { %v6829_v34 = vpop.f32.mrb[116].mxu1  ;;  %v4007_v23 = vpop.f32.mrb[56].mxu0 }
 0x312   : > { %v4691_v16 = vadd.f32 %v4690_v14, %v4007_v23  ;;  %v3551_v38 = vpop.f32.mrb[117].mxu1  ;;  %v4009_v27 = vpop.f32.mrb[57].mxu0 }
 0x313   : > { %v4010_v44 = vpop.f32.mrb[58].mxu0  ;;  %v6832_v47 = vpop.f32.mrb[118].mxu1 }
 0x314   : > { %4178 = vst [vmem:[%s6695_s24 + $0xe0] sm:$0xff] %v4691_v16  ;;  %v4693_v5 = vadd.f32 %v4692_v25, %v4010_v44  ;;  %v3554_v51 = vpop.f32.mrb[119].mxu1  ;;  %v4012_v19 = vpop.f32.mrb[59].mxu0 }
 0x315   : > { %v1502_v25 = vpop.permute.xlu1 %1501  ;;  %v1517_v39 = vpop.permute.xlu0 %1516 }
 0x316   : > { %4179 = vst [vmem:[%s6695_s24 + $0xe8] sm:$0xff] %v4693_v5  ;;  %v4702_v16 = vadd.f32 %v6725_v48, %v1502_v25 }
 0x319   : > { %v6837_v59 = vpop.f32.mrb[120].mxu1  ;;  %v4015_v50 = vpop.f32.mrb[60].mxu0 }
 0x31a   : > { %v4695_v9 = vadd.f32 %v4694_v53, %v4015_v50  ;;  %v3559_v60 = vpop.f32.mrb[121].mxu1  ;;  %v4017_v55 = vpop.f32.mrb[61].mxu0 }
 0x31b   : > { %v4018_v0 = vpop.f32.mrb[62].mxu0  ;;  %v6840_v45 = vpop.f32.mrb[122].mxu1 }
 0x31c   : > { %4180 = vst [vmem:[%s6695_s24 + $0xf0] sm:$0xff] %v4695_v9  ;;  %v4697_v33 = vadd.f32 %v4696_v63, %v4018_v0  ;;  %v3562_v61 = vpop.f32.mrb[123].mxu1  ;;  %v4020_v58 = vpop.f32.mrb[63].mxu0  ;;  %v4708_v63 = vadd.f32 %v6743_v3, %v1517_v39 }
 0x31d   : > { %v1512_v22 = vpop.permute.xlu1 %1511 }
 0x31e   : > { %4181 = vst [vmem:[%s6695_s24 + $0xf8] sm:$0xff] %v4697_v33  ;;  %v4706_v53 = vadd.f32 %v6740_v57, %v1512_v22  ;;  %v1527_v33 = vpop.permute.xlu0 %1526 }
 0x31f   : > { %v4712_v15 = vadd.f32 %v6752_v36, %v1527_v33 }
 0x321   : > { %v6845_v17 = vpop.f32.mrb[124].mxu1  ;;  %v4023_v8 = vpop.f32.mrb[64].mxu0 }
 0x322   : > { %v4699_v24 = vadd.f32 %v4698_v20, %v4023_v8  ;;  %v3567_v29 = vpop.f32.mrb[125].mxu1  ;;  %v4025_v12 = vpop.f32.mrb[65].mxu0 }
 0x323   : > { %v4026_v31 = vpop.f32.mrb[66].mxu0  ;;  %v6848_v13 = vpop.f32.mrb[126].mxu1 }
 0x324   : > { %4182 = vst [vmem:[%s6695_s24 + $0x100] sm:$0xff] %v4699_v24  ;;  %v4701_v40 = vadd.f32 %v4700_v56, %v4026_v31  ;;  %v3570_v14 = vpop.f32.mrb[127].mxu1  ;;  %v4028_v23 = vpop.f32.mrb[67].mxu0 }
 0x325   : > { %v1522_v0 = vpop.permute.xlu1 %1521  ;;  %v1537_v24 = vpop.permute.xlu0 %1536 }
 0x326   : > { %4183 = vst [vmem:[%s6695_s24 + $0x108] sm:$0xff] %v4701_v40  ;;  %v4710_v61 = vadd.f32 %v6749_v52, %v1522_v0  ;;  %v4716_v31 = vadd.f32 %v6760_v49, %v1537_v24 }
 0x329   : > { %v4031_v38 = vpop.f32.mrb[68].mxu0  ;;  %v1532_v56 = vpop.permute.xlu1 %1531 }
 0x32a   : > { %v4703_v27 = vadd.f32 %v4702_v16, %v4031_v38  ;;  %v4033_v44 = vpop.f32.mrb[69].mxu0  ;;  %v4714_v29 = vadd.f32 %v6757_v2, %v1532_v56  ;;  %v1547_v4 = vpop.permute.xlu0 %1546 }
 0x32b   : > { %v4034_v5 = vpop.f32.mrb[70].mxu0 }
 0x32c   : > { %4184 = vst [vmem:[%s6695_s24 + $0x110] sm:$0xff] %v4703_v27  ;;  %v4705_v51 = vadd.f32 %v4704_v21, %v4034_v5  ;;  %v4036_v19 = vpop.f32.mrb[71].mxu0  ;;  %v4720_v21 = vadd.f32 %v6768_v54, %v1547_v4 }
 0x32d   : > { %v1542_v25 = vpop.permute.xlu1 %1541 }
 0x32e   : > { %4185 = vst [vmem:[%s6695_s24 + $0x118] sm:$0xff] %v4705_v51  ;;  %v4718_v16 = vadd.f32 %v6765_v35, %v1542_v25  ;;  %v1557_v19 = vpop.permute.xlu0 %1556 }
 0x331   : > { %v4039_v50 = vpop.f32.mrb[72].mxu0  ;;  %v1552_v51 = vpop.permute.xlu1 %1551 }
 0x332   : > { %v4707_v48 = vadd.f32 %v4706_v53, %v4039_v50  ;;  %v4041_v9 = vpop.f32.mrb[73].mxu0  ;;  %v4722_v22 = vadd.f32 %v6773_v62, %v1552_v51  ;;  %v4724_v53 = vadd.f32 %v6776_v18, %v1557_v19 }
 0x333   : > { %v4042_v37 = vpop.f32.mrb[74].mxu0 }
 0x334   : > { %4186 = vst [vmem:[%s6695_s24 + $0x120] sm:$0xff] %v4707_v48  ;;  %v4709_v60 = vadd.f32 %v4708_v63, %v4042_v37  ;;  %v4044_v55 = vpop.f32.mrb[75].mxu0  ;;  %v1567_v37 = vpop.permute.xlu0 %1566 }
 0x335   : > { %v1562_v9 = vpop.permute.xlu1 %1561  ;;  %v4728_v0 = vadd.f32 %v6784_v28, %v1567_v37 }
 0x336   : > { %4187 = vst [vmem:[%s6695_s24 + $0x128] sm:$0xff] %v4709_v60  ;;  %v4726_v60 = vadd.f32 %v6781_v11, %v1562_v9 }
 0x339   : > { %v4047_v58 = vpop.f32.mrb[76].mxu0 }
 0x33a   : > { %v4711_v57 = vadd.f32 %v4710_v61, %v4047_v58  ;;  %v4049_v7 = vpop.f32.mrb[77].mxu0 }
 0x33b   : > { %v4050_v3 = vpop.f32.mrb[78].mxu0 }
 0x33c   : > { %4188 = vst [vmem:[%s6695_s24 + $0x130] sm:$0xff] %v4711_v57  ;;  %v4713_v20 = vadd.f32 %v4712_v15, %v4050_v3  ;;  %v4052_v8 = vpop.f32.mrb[79].mxu0  ;;  %v1572_v15 = vpop.permute.xlu1 %1571 }
 0x33d   : > { %v1577_v57 = vpop.permute.xlu0 %1576  ;;  %v4730_v7 = vadd.f32 %v6789_v43, %v1572_v15 }
 0x33e   : > { %4189 = vst [vmem:[%s6695_s24 + $0x138] sm:$0xff] %v4713_v20  ;;  %v4732_v20 = vadd.f32 %v6792_v1, %v1577_v57 }
 0x341   : > { %v4055_v12 = vpop.f32.mrb[80].mxu0 }
 0x342   : > { %v4715_v52 = vadd.f32 %v4714_v29, %v4055_v12  ;;  %v4057_v40 = vpop.f32.mrb[81].mxu0  ;;  %v1582_v29 = vpop.permute.xlu1 %1581 }
 0x343   : > { %v4058_v36 = vpop.f32.mrb[82].mxu0  ;;  %v1587_v12 = vpop.permute.xlu0 %1586 }
 0x344   : > { %4190 = vst [vmem:[%s6695_s24 + $0x140] sm:$0xff] %v4715_v52  ;;  %v4717_v14 = vadd.f32 %v4716_v31, %v4058_v36  ;;  %v4060_v23 = vpop.f32.mrb[83].mxu0  ;;  %v4734_v31 = vadd.f32 %v6797_v42, %v1582_v29  ;;  %v4736_v40 = vadd.f32 %v6800_v46, %v1587_v12 }
 0x346   : > { %4191 = vst [vmem:[%s6695_s24 + $0x148] sm:$0xff] %v4717_v14  ;;  %v1592_v25 = vpop.permute.xlu1 %1591 }
 0x347   : > { %v1597_v4 = vpop.permute.xlu0 %1596 }
 0x349   : > { %v4063_v38 = vpop.f32.mrb[84].mxu0 }
 0x34a   : > { %v4719_v2 = vadd.f32 %v4718_v16, %v4063_v38  ;;  %v4065_v27 = vpop.f32.mrb[85].mxu0  ;;  %v4738_v16 = vadd.f32 %v6805_v10, %v1592_v25 }
 0x34b   : > { %v4066_v49 = vpop.f32.mrb[86].mxu0 }
 0x34c   : > { %4192 = vst [vmem:[%s6695_s24 + $0x150] sm:$0xff] %v4719_v2  ;;  %v4721_v44 = vadd.f32 %v4720_v21, %v4066_v49  ;;  %v4068_v5 = vpop.f32.mrb[87].mxu0  ;;  %v4740_v21 = vadd.f32 %v6808_v26, %v1597_v4 }
 0x34d   : > { %v1607_v5 = vpop.permute.xlu0 %1606 }
 0x34e   : > { %4193 = vst [vmem:[%s6695_s24 + $0x158] sm:$0xff] %v4721_v44  ;;  %v1602_v44 = vpop.permute.xlu1 %1601 }
 0x34f   : > { %v4742_v51 = vadd.f32 %v6813_v41, %v1602_v44 }
 0x351   : > { %v4071_v39 = vpop.f32.mrb[88].mxu0 }
 0x352   : > { %v4723_v35 = vadd.f32 %v4722_v22, %v4071_v39  ;;  %v4073_v50 = vpop.f32.mrb[89].mxu0  ;;  %v4744_v22 = vadd.f32 %v6816_v32, %v1607_v5 }
 0x353   : > { %v4074_v54 = vpop.f32.mrb[90].mxu0  ;;  %v1612_v50 = vpop.permute.xlu1 %1611 }
 0x354   : > { %4194 = vst [vmem:[%s6695_s24 + $0x160] sm:$0xff] %v4723_v35  ;;  %v4725_v63 = vadd.f32 %v4724_v53, %v4074_v54  ;;  %v4076_v48 = vpop.f32.mrb[91].mxu0  ;;  %v1617_v54 = vpop.permute.xlu0 %1616 }
 0x355   : > { %v4748_v9 = vadd.f32 %v6824_v30, %v1617_v54 }
 0x356   : > { %4195 = vst [vmem:[%s6695_s24 + $0x168] sm:$0xff] %v4725_v63  ;;  %v4746_v63 = vadd.f32 %v6821_v6, %v1612_v50 }
 0x359   : > { %v4079_v55 = vpop.f32.mrb[92].mxu0 }
 0x35a   : > { %v4727_v62 = vadd.f32 %v4726_v60, %v4079_v55  ;;  %v4081_v33 = vpop.f32.mrb[93].mxu0 }
 0x35b   : > { %v4082_v18 = vpop.f32.mrb[94].mxu0 }
 0x35c   : > { %4196 = vst [vmem:[%s6695_s24 + $0x170] sm:$0xff] %v4727_v62  ;;  %v4729_v61 = vadd.f32 %v4728_v0, %v4082_v18  ;;  %v4084_v58 = vpop.f32.mrb[95].mxu0  ;;  %v1622_v0 = vpop.permute.xlu1 %1621 }
 0x35d   : > { %v1627_v62 = vpop.permute.xlu0 %1626  ;;  %v4750_v33 = vadd.f32 %v6829_v34, %v1622_v0 }
 0x35e   : > { %4197 = vst [vmem:[%s6695_s24 + $0x178] sm:$0xff] %v4729_v61  ;;  %v4752_v61 = vadd.f32 %v6832_v47, %v1627_v62 }
 0x361   : > { %v4087_v3 = vpop.f32.mrb[96].mxu0 }
 0x362   : > { %v4731_v11 = vadd.f32 %v4730_v7, %v4087_v3  ;;  %v4089_v8 = vpop.f32.mrb[97].mxu0  ;;  %v1632_v7 = vpop.permute.xlu1 %1631 }
 0x363   : > { %v4090_v28 = vpop.f32.mrb[98].mxu0  ;;  %v4754_v3 = vadd.f32 %v6837_v59, %v1632_v7 }
 0x364   : > { %4198 = vst [vmem:[%s6695_s24 + $0x180] sm:$0xff] %v4731_v11  ;;  %v4733_v56 = vadd.f32 %v4732_v20, %v4090_v28  ;;  %v4092_v24 = vpop.f32.mrb[99].mxu0  ;;  %v1637_v20 = vpop.permute.xlu0 %1636 }
 0x365   : > { %v4756_v8 = vadd.f32 %v6840_v45, %v1637_v20 }
 0x366   : > { %4199 = vst [vmem:[%s6695_s24 + $0x188] sm:$0xff] %v4733_v56  ;;  %v1642_v29 = vpop.permute.xlu1 %1641 }
 0x367   : > { %v4758_v12 = vadd.f32 %v6845_v17, %v1642_v29 }
 0x369   : > { %v4095_v52 = vpop.f32.mrb[100].mxu0 }
 0x36a   : > { %v4735_v43 = vadd.f32 %v4734_v31, %v4095_v52  ;;  %v4097_v36 = vpop.f32.mrb[101].mxu0  ;;  %v1647_v31 = vpop.permute.xlu0 %1646 }
 0x36b   : > { %v4098_v1 = vpop.f32.mrb[102].mxu0  ;;  %v4760_v59 = vadd.f32 %v6848_v13, %v1647_v31 }
 0x36c   : > { %4200 = vst [vmem:[%s6695_s24 + $0x190] sm:$0xff] %v4735_v43  ;;  %v4737_v14 = vadd.f32 %v4736_v40, %v4098_v1  ;;  %v4100_v23 = vpop.f32.mrb[103].mxu0 }
 0x36e   : > { %4201 = vst [vmem:[%s6695_s24 + $0x198] sm:$0xff] %v4737_v14 }
 0x371   : > { %v4103_v38 = vpop.f32.mrb[104].mxu0 }
 0x372   : > { %v4739_v42 = vadd.f32 %v4738_v16, %v4103_v38  ;;  %v4105_v2 = vpop.f32.mrb[105].mxu0 }
 0x373   : > { %v4106_v46 = vpop.f32.mrb[106].mxu0 }
 0x374   : > { %4202 = vst [vmem:[%s6695_s24 + $0x1a0] sm:$0xff] %v4739_v42  ;;  %v4741_v27 = vadd.f32 %v4740_v21, %v4106_v46  ;;  %v4108_v49 = vpop.f32.mrb[107].mxu0 }
 0x376   : > { %4203 = vst [vmem:[%s6695_s24 + $0x1a8] sm:$0xff] %v4741_v27 }
 0x379   : > { %v4111_v19 = vpop.f32.mrb[108].mxu0 }
 0x37a   : > { %v4743_v10 = vadd.f32 %v4742_v51, %v4111_v19  ;;  %v4113_v39 = vpop.f32.mrb[109].mxu0 }
 0x37b   : > { %v4114_v26 = vpop.f32.mrb[110].mxu0 }
 0x37c   : > { %4204 = vst [vmem:[%s6695_s24 + $0x1b0] sm:$0xff] %v4743_v10  ;;  %v4745_v53 = vadd.f32 %v4744_v22, %v4114_v26  ;;  %v4116_v35 = vpop.f32.mrb[111].mxu0 }
 0x37e   : > { %4205 = vst [vmem:[%s6695_s24 + $0x1b8] sm:$0xff] %v4745_v53 }
 0x381   : > { %v4119_v48 = vpop.f32.mrb[112].mxu0 }
 0x382   : > { %v4747_v41 = vadd.f32 %v4746_v63, %v4119_v48  ;;  %v4121_v37 = vpop.f32.mrb[113].mxu0 }
 0x383   : > { %v4122_v32 = vpop.f32.mrb[114].mxu0 }
 0x384   : > { %4206 = vst [vmem:[%s6695_s24 + $0x1c0] sm:$0xff] %v4747_v41  ;;  %v4749_v60 = vadd.f32 %v4748_v9, %v4122_v32  ;;  %v4124_v55 = vpop.f32.mrb[115].mxu0 }
 0x386   : > { %4207 = vst [vmem:[%s6695_s24 + $0x1c8] sm:$0xff] %v4749_v60 }
 0x389   : > { %v4127_v18 = vpop.f32.mrb[116].mxu0 }
 0x38a   : > { %v4751_v6 = vadd.f32 %v4750_v33, %v4127_v18  ;;  %v4129_v58 = vpop.f32.mrb[117].mxu0 }
 0x38b   : > { %v4130_v30 = vpop.f32.mrb[118].mxu0 }
 0x38c   : > { %4208 = vst [vmem:[%s6695_s24 + $0x1d0] sm:$0xff] %v4751_v6  ;;  %v4753_v15 = vadd.f32 %v4752_v61, %v4130_v30  ;;  %v4132_v57 = vpop.f32.mrb[119].mxu0 }
 0x38e   : > { %4209 = vst [vmem:[%s6695_s24 + $0x1d8] sm:$0xff] %v4753_v15 }
 0x391   : > { %v4135_v11 = vpop.f32.mrb[120].mxu0 }
 0x392   : > { %v4755_v34 = vadd.f32 %v4754_v3, %v4135_v11  ;;  %v4137_v28 = vpop.f32.mrb[121].mxu0 }
 0x393   : > { %v4138_v47 = vpop.f32.mrb[122].mxu0 }
 0x394   : > { %4210 = vst [vmem:[%s6695_s24 + $0x1e0] sm:$0xff] %v4755_v34  ;;  %v4757_v56 = vadd.f32 %v4756_v8, %v4138_v47  ;;  %v4140_v24 = vpop.f32.mrb[123].mxu0 }
 0x396   : > { %4211 = vst [vmem:[%s6695_s24 + $0x1e8] sm:$0xff] %v4757_v56 }
 0x399   : > { %v4143_v52 = vpop.f32.mrb[124].mxu0 }
 0x39a   : > { %v4759_v40 = vadd.f32 %v4758_v12, %v4143_v52  ;;  %v4145_v43 = vpop.f32.mrb[125].mxu0 }
 0x39b   : > { %v4146_v36 = vpop.f32.mrb[126].mxu0 }
 0x39c   : > { %4212 = vst [vmem:[%s6695_s24 + $0x1f0] sm:$0xff] %v4759_v40  ;;  %v4761_v45 = vadd.f32 %v4760_v59, %v4146_v36  ;;  %v4148_v1 = vpop.f32.mrb[127].mxu0 }
 0x39e   : > { %4213 = vst [vmem:[%s6695_s24 + $0x1f8] sm:$0xff] %v4761_v45 }
 0x39f PF: > { %s14_s17 = sadd.s32 1, %s5071_s17   ;;  %s6928_s15 = smov %s5067_s16 }
 0x3a0   : > { %p11_p5 = scmp.ge.s32.totalorder %s14_s17, 4   ;;  %s6929_s16 = smov %s6931_s18 }
 0x3a2   :  { %13 = sbr.rel (!%p11_p5) target bundleno = 2 (0x2), region = 69 }

</bundles_post_ra>
